<compile_context>
chip_gen: v7x
topology: tpu7x:2x2x1
jax: 0.10.0
libtpu: 0.0.40
codegen_flags: <defaults>
</compile_context>

<pallas_src>
import functools
import math

import jax
import jax.numpy as jnp
from jax.experimental import pallas as pl
from jax.experimental.pallas import tpu as pltpu

LANE = 128
MAX_TILE_R = 512            # rows of 128 lanes per grid step (512*128 px/step)
_F32 = jnp.float32

# Constants of the differentiable rgb2lab / CIEDE2000 reference code.
_XN, _YN, _ZN = 95.0489, 100.0, 108.8840
_DEG = 180.0 / math.pi
_RAD = math.pi / 180.0
_POW7_25 = 25.0 ** 7


# ----------------------------------------------------------------------------
# Color math helpers (pure jnp; shared by the Pallas kernel and the reference)
# ----------------------------------------------------------------------------
def _pow7(x):
    x2 = x * x
    x3 = x2 * x
    return x3 * x3 * x


def _srgb_expand(c):
    """sRGB gamma expansion * 100 (mirrors rgb2xyz in the PyTorch code)."""
    hi = jnp.exp(2.4 * jnp.log((c + 0.055) / 1.055))    # base > 0 for c >= 0
    lo = c / 12.92
    m = (c > 0.0405).astype(_F32)
    return 100.0 * (m * hi + (1.0 - m) * lo)


def _xyz_lab_f(t):
    """f() of xyz_lab in the PyTorch code, with its ==0 masking trick."""
    m0 = (t == 0.0).astype(_F32)
    tc = t + m0
    cbrt = jnp.exp(jnp.log(tc) / 3.0)
    temp = cbrt * (1.0 - m0) + m0
    m1 = (tc > 0.008856).astype(_F32)
    return temp * m1 + (7.787 * tc + 0.137931) * (1.0 - m1)


def _rgb_to_lab(r, g, b):
    rl, gl, bl = _srgb_expand(r), _srgb_expand(g), _srgb_expand(b)
    x = 0.4124 * rl + 0.3576 * gl + 0.1805 * bl
    y = 0.2126 * rl + 0.7152 * gl + 0.0722 * bl
    z = 0.0193 * rl + 0.1192 * gl + 0.9504 * bl
    fx = _xyz_lab_f(x * (1.0 / _XN))
    fy = _xyz_lab_f(y * (1.0 / _YN))
    fz = _xyz_lab_f(z * (1.0 / _ZN))
    L = 116.0 * fy - 16.0
    a = 500.0 * (fx - fy)
    bb = 200.0 * (fy - fz)
    return L, a, bb


def _hpf(x, y):
    m = jnp.logical_and(x == 0.0, y == 0.0).astype(_F32)
    mn = 1.0 - m
    h = jnp.arctan2(x * mn, y * mn) * _DEG
    return h * (h >= 0.0).astype(_F32) + (360.0 + h) * (h < 0.0).astype(_F32)


def _dhpf(c1, c2, h1p, h2p):
    mn = 1.0 - ((c1 * c2) == 0.0).astype(_F32)
    d = h2p - h1p
    r1 = d * mn * (jnp.abs(d) <= 180.0).astype(_F32)
    r2 = (d - 360.0) * (d > 180.0).astype(_F32) * mn
    r3 = (d + 360.0) * (d < -180.0).astype(_F32) * mn
    return r1 + r2 + r3


def _ahpf(c1, c2, h1p, h2p):
    m1 = ((c1 * c2) == 0.0).astype(_F32)
    m1n = 1.0 - m1
    m2 = (jnp.abs(h2p - h1p) <= 180.0).astype(_F32)
    m2n = 1.0 - m2
    m3 = (jnp.abs(h2p + h1p) < 360.0).astype(_F32)
    m3n = 1.0 - m3
    s = h1p + h2p
    r = s * m1n * m2 + (s + 360.0) * m1n * m2n * m3 + (s - 360.0) * m1n * m2n * m3n
    return (r + r * m1) * 0.5


def _ciede2000(lab1, lab2):
    """Per-pixel CIEDE2000 (kL=kC=kH=1), mirroring ciede2000_diff."""
    L1, A1, B1 = lab1
    L2, A2, B2 = lab2
    m01 = jnp.logical_and(A1 == 0.0, B1 == 0.0).astype(_F32)
    m02 = jnp.logical_and(A2 == 0.0, B2 == 0.0).astype(_F32)
    B1 = B1 + 1e-4 * m01
    B2 = B2 + 1e-4 * m02

    C1 = jnp.sqrt(A1 * A1 + B1 * B1)
    C2 = jnp.sqrt(A2 * A2 + B2 * B2)
    aC = (C1 + C2) * 0.5
    a7 = _pow7(aC)
    G = 0.5 * (1.0 - jnp.sqrt(a7 / (a7 + _POW7_25)))
    a1P = (1.0 + G) * A1
    a2P = (1.0 + G) * A2
    c1P = jnp.sqrt(a1P * a1P + B1 * B1)
    c2P = jnp.sqrt(a2P * a2P + B2 * B2)
    h1P = _hpf(B1, a1P) * (1.0 - m01)
    h2P = _hpf(B2, a2P) * (1.0 - m02)

    dLP = L2 - L1
    dCP = c2P - c1P
    dhP = _dhpf(C1, C2, h1P, h2P)
    dHP = 2.0 * jnp.sqrt(c1P * c2P) * jnp.sin(dhP * (0.5 * _RAD))
    mask0n = 1.0 - jnp.maximum(m01, m02)
    dHP = dHP * mask0n

    aL = (L1 + L2) * 0.5
    aCP = (c1P + c2P) * 0.5
    aHP = _ahpf(C1, C2, h1P, h2P)
    T = (1.0
         - 0.17 * jnp.cos((aHP - 39.0) * _RAD)
         + 0.24 * jnp.cos((2.0 * aHP) * _RAD)
         + 0.32 * jnp.cos((3.0 * aHP + 6.0) * _RAD)
         - 0.20 * jnp.cos((4.0 * aHP - 63.0) * _RAD))
    dRO = 30.0 * jnp.exp(-(((aHP - 275.0) / 25.0) ** 2))
    acp7 = _pow7(aCP)
    rC = jnp.sqrt(acp7 / (acp7 + _POW7_25))
    aL50 = (aL - 50.0) ** 2
    sL = 1.0 + 0.015 * aL50 / jnp.sqrt(20.0 + aL50)
    sC = 1.0 + 0.045 * aCP
    sH = 1.0 + 0.015 * aCP * T
    rT = -2.0 * rC * jnp.sin((2.0 * dRO) * _RAD)

    tL = dLP / sL
    tC = dCP / sC
    tH = dHP / sH
    res_sq = tL * tL + (tC * tC + tH * tH + rT * tC * tH) * mask0n
    m0 = (res_sq <= 0.0).astype(_F32)
    return jnp.sqrt(res_sq + 1e-4 * m0) * (1.0 - m0)


# ----------------------------------------------------------------------------
# Pallas kernel: fused Lab conversion + CIEDE2000 + per-step partial sum
# ----------------------------------------------------------------------------
def _deltae_kernel(fake_ref, gt_ref, out_ref, *, p_true, tile_r):
    i = pl.program_id(0)

    # Ragged-tail validity mask (flat pixel index = row*128 + lane).  Padded
    # pixels are exact zeros (jnp.pad) and provably yield deltaE == 0, but the
    # mask is a handful of VALU ops (free filler in this EUP-bound kernel) and
    # keeps the reduction robust.
    row = jax.lax.broadcasted_iota(jnp.int32, (tile_r, LANE), 0) + i * tile_r
    lane = jax.lax.broadcasted_iota(jnp.int32, (tile_r, LANE), 1)
    valid = (row * LANE + lane) < p_true

    rf, gf, bf = fake_ref[0], fake_ref[1], fake_ref[2]
    rg, gg, bg = gt_ref[0], gt_ref[1], gt_ref[2]

    lab_fake = _rgb_to_lab(rf, gf, bf)
    lab_gt = _rgb_to_lab(rg, gg, bg)

    # deltaE_Loss(fake, gt) == ciede2000_diff(lab(gt), lab(fake))
    de = jnp.where(valid, _ciede2000(lab_gt, lab_fake), 0.0)

    # Per-step partial sums: sublane reduce only.  Each grid step owns its own
    # output block, so no state is carried across steps and the grid axis can
    # be "parallel" (megacore split on v7x).  Lane reduce + mean stay in XLA.
    out_ref[...] = jnp.sum(de, axis=0, keepdims=True).reshape(1, 1, LANE)


# ----------------------------------------------------------------------------
# Module forward (wrapper)
# ----------------------------------------------------------------------------
def _normalization_image(x):
    # TODO(synk): normalization_image is not defined in the spec; assuming
    # global min-max normalization of the RGB tensor to [0, 1].
    mn = jnp.min(x)
    mx = jnp.max(x)
    return (x - mn) / jnp.maximum(mx - mn, 1e-8)


def loss_delta_e(outputs, label, hs2rgb_weight, rgb_gt=None):
    """Pallas-accelerated Loss_DeltaE.forward(outputs, label, rgb_gt)."""
    w = hs2rgb_weight.astype(_F32)                            # (3, 31)
    # 1x1 conv == per-pixel 31->3 matmul; emit channel-major layout directly.
    rgb_fake = jnp.einsum("ck,nkhw->cnhw", w, outputs.astype(_F32))
    if rgb_gt is None:
        rgb_label = jnp.einsum("ck,nkhw->cnhw", w, label.astype(_F32))
    else:
        rgb_label = jnp.transpose(rgb_gt.astype(_F32), (1, 0, 2, 3))

    n, h, wd = rgb_fake.shape[1], rgb_fake.shape[2], rgb_fake.shape[3]
    p_true = n * h * wd

    rows = -(-p_true // LANE)
    tile_r = min(MAX_TILE_R, ((rows + 7) // 8) * 8)
    rows_pad = -(-rows // tile_r) * tile_r
    pad = rows_pad * LANE - p_true
    n_steps = rows_pad // tile_r

    def to_slab(x):
        # Normalization is fused by XLA into this (required) re-layout copy.
        x = _normalization_image(x).reshape(3, p_true)
        x = jnp.pad(x, ((0, 0), (0, pad)))
        return x.reshape(3, rows_pad, LANE)

    fake_slab = to_slab(rgb_fake)
    gt_slab = to_slab(rgb_label)

    kernel = functools.partial(_deltae_kernel, p_true=p_true, tile_r=tile_r)

    partial_sums = pl.pallas_call(
        kernel,
        out_shape=jax.ShapeDtypeStruct((n_steps, 1, LANE), _F32),
        grid_spec=pltpu.PrefetchScalarGridSpec(
            num_scalar_prefetch=0,
            grid=(n_steps,),
            in_specs=[
                pl.BlockSpec((3, tile_r, LANE), lambda i: (0, i, 0)),
                pl.BlockSpec((3, tile_r, LANE), lambda i: (0, i, 0)),
            ],
            out_specs=pl.BlockSpec((1, 1, LANE), lambda i: (i, 0, 0)),
        ),
        compiler_params=pltpu.CompilerParams(
            dimension_semantics=("parallel",),
            vmem_limit_bytes=32 * 1024 * 1024,
        ),
    )(fake_slab, gt_slab)

    return jnp.sum(partial_sums) / jnp.float32(p_true)


# ----------------------------------------------------------------------------
# Pure-JAX reference (same color math, no Pallas) + weights + demo
# ----------------------------------------------------------------------------
def loss_delta_e_ref(outputs, label, hs2rgb_weight, rgb_gt=None):
    w = hs2rgb_weight.astype(_F32)
    rgb_fake = jnp.einsum("ck,nkhw->cnhw", w, outputs.astype(_F32))
    if rgb_gt is None:
        rgb_label = jnp.einsum("ck,nkhw->cnhw", w, label.astype(_F32))
    else:
        rgb_label = jnp.transpose(rgb_gt.astype(_F32), (1, 0, 2, 3))
    f = _normalization_image(rgb_fake).reshape(3, -1)
    g = _normalization_image(rgb_label).reshape(3, -1)
    lab_f = _rgb_to_lab(f[0], f[1], f[2])
    lab_g = _rgb_to_lab(g[0], g[1], g[2])
    return jnp.mean(_ciede2000(lab_g, lab_f))


def make_hs2rgb_weight():
    # TODO(synk): CAM_FILTER numeric values are not part of the spec; use a
    # deterministic CIE-like Gaussian camera-response matrix (31 bands,
    # 400-700 nm), transposed to (3, 31) exactly like the Conv2d weight.
    wl = jnp.linspace(400.0, 700.0, 31)

    def g(mu, sig):
        return jnp.exp(-0.5 * ((wl - mu) / sig) ** 2)

    cam_filter = jnp.stack([g(610.0, 45.0), g(550.0, 40.0), g(465.0, 35.0)],
                           axis=1)                      # (31, 3) like CAM_FILTER
    return jnp.transpose(cam_filter, (1, 0)).astype(_F32)    # (3, 31)


if __name__ == "__main__":
    key = jax.random.PRNGKey(0)
    k1, k2, k3 = jax.random.split(key, 3)

    N, C, H, W = 2, 31, 16, 16
    outputs = jax.random.uniform(k1, (N, C, H, W), dtype=jnp.float32)
    label = jax.random.uniform(k2, (N, C, H, W), dtype=jnp.float32)
    weight = make_hs2rgb_weight()

    # Branch 1: rgb_gt is None -> both RGB images come from the hs2rgb conv.
    res1 = jax.block_until_ready(loss_delta_e(outputs, label, weight))
    ref1 = loss_delta_e_ref(outputs, label, weight)
    assert bool(jnp.isfinite(res1)), res1
    assert jnp.allclose(res1, ref1, rtol=2e-3, atol=2e-3), (res1, ref1)

    # Branch 2: explicit rgb_gt supplied.
    rgb_gt = jax.random.uniform(k3, (N, 3, H, W), dtype=jnp.float32)
    res2 = jax.block_until_ready(
        loss_delta_e(outputs, label, weight, rgb_gt=rgb_gt))
    ref2 = loss_delta_e_ref(outputs, label, weight, rgb_gt=rgb_gt)
    assert bool(jnp.isfinite(res2)), res2
    assert jnp.allclose(res2, ref2, rtol=2e-3, atol=2e-3), (res2, ref2)

    print("KERNEL_OK")
</pallas_src>

<mosaic_0001>
module attributes {stable_mosaic.version = 11 : i64} {
  func.func @_deltae_kernel(%arg0: i32, %arg1: memref<3x8x128xf32, #tpu.memory_space<vmem>>, %arg2: memref<3x8x128xf32, #tpu.memory_space<vmem>>, %arg3: memref<1x1x128xf32, #tpu.memory_space<vmem>>) attributes {dimension_semantics = [#tpu.dimension_semantics<parallel>], iteration_bounds = array<i64: 1>, scalar_prefetch = 0 : i64, scratch_operands = 0 : i64, tpu.core_type = #tpu.core_type<tc>, window_params = [{transform_indices = @transform_0, window_bounds = array<i64: 3, 8, 128>}, {transform_indices = @transform_1, window_bounds = array<i64: 3, 8, 128>}, {transform_indices = @transform_2, window_bounds = array<i64: 1, 1, 128>}]} {
    %0 = tpu.iota {dimensions = array<i32: 0>} : vector<8x128xi32>
    %c8_i32 = arith.constant 8 : i32
    %1 = arith.muli %arg0, %c8_i32 : i32
    %2 = vector.broadcast %1 : i32 to vector<8x128xi32>
    %3 = arith.addi %0, %2 : vector<8x128xi32>
    %4 = tpu.iota {dimensions = array<i32: 1>} : vector<8x128xi32>
    %c128_i32 = arith.constant 128 : i32
    %5 = vector.broadcast %c128_i32 : i32 to vector<8x128xi32>
    %6 = arith.muli %3, %5 : vector<8x128xi32>
    %7 = arith.addi %6, %4 : vector<8x128xi32>
    %c512_i32 = arith.constant 512 : i32
    %8 = vector.broadcast %c512_i32 : i32 to vector<8x128xi32>
    %9 = arith.cmpi slt, %7, %8 : vector<8x128xi32>
    %c0 = arith.constant 0 : index
    %c0_0 = arith.constant 0 : index
    %c0_1 = arith.constant 0 : index
    %10 = vector.load %arg1[%c0, %c0_0, %c0_1] : memref<3x8x128xf32, #tpu.memory_space<vmem>>, vector<1x8x128xf32>
    %11 = vector.shape_cast %10 : vector<1x8x128xf32> to vector<8x128xf32>
    %c1 = arith.constant 1 : index
    %c0_2 = arith.constant 0 : index
    %c0_3 = arith.constant 0 : index
    %12 = vector.load %arg1[%c1, %c0_2, %c0_3] : memref<3x8x128xf32, #tpu.memory_space<vmem>>, vector<1x8x128xf32>
    %13 = vector.shape_cast %12 : vector<1x8x128xf32> to vector<8x128xf32>
    %c2 = arith.constant 2 : index
    %c0_4 = arith.constant 0 : index
    %c0_5 = arith.constant 0 : index
    %14 = vector.load %arg1[%c2, %c0_4, %c0_5] : memref<3x8x128xf32, #tpu.memory_space<vmem>>, vector<1x8x128xf32>
    %15 = vector.shape_cast %14 : vector<1x8x128xf32> to vector<8x128xf32>
    %c0_6 = arith.constant 0 : index
    %c0_7 = arith.constant 0 : index
    %c0_8 = arith.constant 0 : index
    %16 = vector.load %arg2[%c0_6, %c0_7, %c0_8] : memref<3x8x128xf32, #tpu.memory_space<vmem>>, vector<1x8x128xf32>
    %17 = vector.shape_cast %16 : vector<1x8x128xf32> to vector<8x128xf32>
    %c1_9 = arith.constant 1 : index
    %c0_10 = arith.constant 0 : index
    %c0_11 = arith.constant 0 : index
    %18 = vector.load %arg2[%c1_9, %c0_10, %c0_11] : memref<3x8x128xf32, #tpu.memory_space<vmem>>, vector<1x8x128xf32>
    %19 = vector.shape_cast %18 : vector<1x8x128xf32> to vector<8x128xf32>
    %c2_12 = arith.constant 2 : index
    %c0_13 = arith.constant 0 : index
    %c0_14 = arith.constant 0 : index
    %20 = vector.load %arg2[%c2_12, %c0_13, %c0_14] : memref<3x8x128xf32, #tpu.memory_space<vmem>>, vector<1x8x128xf32>
    %21 = vector.shape_cast %20 : vector<1x8x128xf32> to vector<8x128xf32>
    %cst = arith.constant 5.500000e-02 : f32
    %22 = vector.broadcast %cst : f32 to vector<8x128xf32>
    %23 = arith.addf %11, %22 : vector<8x128xf32>
    %cst_15 = arith.constant 1.055000e+00 : f32
    %24 = vector.broadcast %cst_15 : f32 to vector<8x128xf32>
    %25 = arith.divf %23, %24 : vector<8x128xf32>
    %26 = math.log %25 : vector<8x128xf32>
    %cst_16 = arith.constant 2.400000e+00 : f32
    %27 = vector.broadcast %cst_16 : f32 to vector<8x128xf32>
    %28 = arith.mulf %27, %26 : vector<8x128xf32>
    %29 = math.exp %28 : vector<8x128xf32>
    %cst_17 = arith.constant 1.292000e+01 : f32
    %30 = vector.broadcast %cst_17 : f32 to vector<8x128xf32>
    %31 = arith.divf %11, %30 : vector<8x128xf32>
    %cst_18 = arith.constant 4.050000e-02 : f32
    %32 = vector.broadcast %cst_18 : f32 to vector<8x128xf32>
    %33 = arith.cmpf ogt, %11, %32 : vector<8x128xf32>
    %34 = arith.extui %33 : vector<8x128xi1> to vector<8x128xi32>
    %35 = arith.sitofp %34 : vector<8x128xi32> to vector<8x128xf32>
    %36 = arith.mulf %35, %29 : vector<8x128xf32>
    %cst_19 = arith.constant 1.000000e+00 : f32
    %37 = vector.broadcast %cst_19 : f32 to vector<8x128xf32>
    %38 = arith.subf %37, %35 : vector<8x128xf32>
    %39 = arith.mulf %38, %31 : vector<8x128xf32>
    %40 = arith.addf %36, %39 : vector<8x128xf32>
    %cst_20 = arith.constant 1.000000e+02 : f32
    %41 = vector.broadcast %cst_20 : f32 to vector<8x128xf32>
    %42 = arith.mulf %41, %40 : vector<8x128xf32>
    %cst_21 = arith.constant 5.500000e-02 : f32
    %43 = vector.broadcast %cst_21 : f32 to vector<8x128xf32>
    %44 = arith.addf %13, %43 : vector<8x128xf32>
    %cst_22 = arith.constant 1.055000e+00 : f32
    %45 = vector.broadcast %cst_22 : f32 to vector<8x128xf32>
    %46 = arith.divf %44, %45 : vector<8x128xf32>
    %47 = math.log %46 : vector<8x128xf32>
    %cst_23 = arith.constant 2.400000e+00 : f32
    %48 = vector.broadcast %cst_23 : f32 to vector<8x128xf32>
    %49 = arith.mulf %48, %47 : vector<8x128xf32>
    %50 = math.exp %49 : vector<8x128xf32>
    %cst_24 = arith.constant 1.292000e+01 : f32
    %51 = vector.broadcast %cst_24 : f32 to vector<8x128xf32>
    %52 = arith.divf %13, %51 : vector<8x128xf32>
    %cst_25 = arith.constant 4.050000e-02 : f32
    %53 = vector.broadcast %cst_25 : f32 to vector<8x128xf32>
    %54 = arith.cmpf ogt, %13, %53 : vector<8x128xf32>
    %55 = arith.extui %54 : vector<8x128xi1> to vector<8x128xi32>
    %56 = arith.sitofp %55 : vector<8x128xi32> to vector<8x128xf32>
    %57 = arith.mulf %56, %50 : vector<8x128xf32>
    %cst_26 = arith.constant 1.000000e+00 : f32
    %58 = vector.broadcast %cst_26 : f32 to vector<8x128xf32>
    %59 = arith.subf %58, %56 : vector<8x128xf32>
    %60 = arith.mulf %59, %52 : vector<8x128xf32>
    %61 = arith.addf %57, %60 : vector<8x128xf32>
    %cst_27 = arith.constant 1.000000e+02 : f32
    %62 = vector.broadcast %cst_27 : f32 to vector<8x128xf32>
    %63 = arith.mulf %62, %61 : vector<8x128xf32>
    %cst_28 = arith.constant 5.500000e-02 : f32
    %64 = vector.broadcast %cst_28 : f32 to vector<8x128xf32>
    %65 = arith.addf %15, %64 : vector<8x128xf32>
    %cst_29 = arith.constant 1.055000e+00 : f32
    %66 = vector.broadcast %cst_29 : f32 to vector<8x128xf32>
    %67 = arith.divf %65, %66 : vector<8x128xf32>
    %68 = math.log %67 : vector<8x128xf32>
    %cst_30 = arith.constant 2.400000e+00 : f32
    %69 = vector.broadcast %cst_30 : f32 to vector<8x128xf32>
    %70 = arith.mulf %69, %68 : vector<8x128xf32>
    %71 = math.exp %70 : vector<8x128xf32>
    %cst_31 = arith.constant 1.292000e+01 : f32
    %72 = vector.broadcast %cst_31 : f32 to vector<8x128xf32>
    %73 = arith.divf %15, %72 : vector<8x128xf32>
    %cst_32 = arith.constant 4.050000e-02 : f32
    %74 = vector.broadcast %cst_32 : f32 to vector<8x128xf32>
    %75 = arith.cmpf ogt, %15, %74 : vector<8x128xf32>
    %76 = arith.extui %75 : vector<8x128xi1> to vector<8x128xi32>
    %77 = arith.sitofp %76 : vector<8x128xi32> to vector<8x128xf32>
    %78 = arith.mulf %77, %71 : vector<8x128xf32>
    %cst_33 = arith.constant 1.000000e+00 : f32
    %79 = vector.broadcast %cst_33 : f32 to vector<8x128xf32>
    %80 = arith.subf %79, %77 : vector<8x128xf32>
    %81 = arith.mulf %80, %73 : vector<8x128xf32>
    %82 = arith.addf %78, %81 : vector<8x128xf32>
    %cst_34 = arith.constant 1.000000e+02 : f32
    %83 = vector.broadcast %cst_34 : f32 to vector<8x128xf32>
    %84 = arith.mulf %83, %82 : vector<8x128xf32>
    %cst_35 = arith.constant 4.124000e-01 : f32
    %85 = vector.broadcast %cst_35 : f32 to vector<8x128xf32>
    %86 = arith.mulf %85, %42 : vector<8x128xf32>
    %cst_36 = arith.constant 3.576000e-01 : f32
    %87 = vector.broadcast %cst_36 : f32 to vector<8x128xf32>
    %88 = arith.mulf %87, %63 : vector<8x128xf32>
    %89 = arith.addf %86, %88 : vector<8x128xf32>
    %cst_37 = arith.constant 1.805000e-01 : f32
    %90 = vector.broadcast %cst_37 : f32 to vector<8x128xf32>
    %91 = arith.mulf %90, %84 : vector<8x128xf32>
    %92 = arith.addf %89, %91 : vector<8x128xf32>
    %cst_38 = arith.constant 2.126000e-01 : f32
    %93 = vector.broadcast %cst_38 : f32 to vector<8x128xf32>
    %94 = arith.mulf %93, %42 : vector<8x128xf32>
    %cst_39 = arith.constant 7.152000e-01 : f32
    %95 = vector.broadcast %cst_39 : f32 to vector<8x128xf32>
    %96 = arith.mulf %95, %63 : vector<8x128xf32>
    %97 = arith.addf %94, %96 : vector<8x128xf32>
    %cst_40 = arith.constant 7.220000e-02 : f32
    %98 = vector.broadcast %cst_40 : f32 to vector<8x128xf32>
    %99 = arith.mulf %98, %84 : vector<8x128xf32>
    %100 = arith.addf %97, %99 : vector<8x128xf32>
    %cst_41 = arith.constant 1.930000e-02 : f32
    %101 = vector.broadcast %cst_41 : f32 to vector<8x128xf32>
    %102 = arith.mulf %101, %42 : vector<8x128xf32>
    %cst_42 = arith.constant 1.192000e-01 : f32
    %103 = vector.broadcast %cst_42 : f32 to vector<8x128xf32>
    %104 = arith.mulf %103, %63 : vector<8x128xf32>
    %105 = arith.addf %102, %104 : vector<8x128xf32>
    %cst_43 = arith.constant 0.950399994 : f32
    %106 = vector.broadcast %cst_43 : f32 to vector<8x128xf32>
    %107 = arith.mulf %106, %84 : vector<8x128xf32>
    %108 = arith.addf %105, %107 : vector<8x128xf32>
    %cst_44 = arith.constant 0.0105209006 : f32
    %109 = vector.broadcast %cst_44 : f32 to vector<8x128xf32>
    %110 = arith.mulf %92, %109 : vector<8x128xf32>
    %cst_45 = arith.constant 0.000000e+00 : f32
    %111 = vector.broadcast %cst_45 : f32 to vector<8x128xf32>
    %112 = arith.cmpf oeq, %110, %111 : vector<8x128xf32>
    %113 = arith.extui %112 : vector<8x128xi1> to vector<8x128xi32>
    %114 = arith.sitofp %113 : vector<8x128xi32> to vector<8x128xf32>
    %115 = arith.addf %110, %114 : vector<8x128xf32>
    %116 = math.log %115 : vector<8x128xf32>
    %cst_46 = arith.constant 3.000000e+00 : f32
    %117 = vector.broadcast %cst_46 : f32 to vector<8x128xf32>
    %118 = arith.divf %116, %117 : vector<8x128xf32>
    %119 = math.exp %118 : vector<8x128xf32>
    %cst_47 = arith.constant 1.000000e+00 : f32
    %120 = vector.broadcast %cst_47 : f32 to vector<8x128xf32>
    %121 = arith.subf %120, %114 : vector<8x128xf32>
    %122 = arith.mulf %119, %121 : vector<8x128xf32>
    %123 = arith.addf %122, %114 : vector<8x128xf32>
    %cst_48 = arith.constant 8.856000e-03 : f32
    %124 = vector.broadcast %cst_48 : f32 to vector<8x128xf32>
    %125 = arith.cmpf ogt, %115, %124 : vector<8x128xf32>
    %126 = arith.extui %125 : vector<8x128xi1> to vector<8x128xi32>
    %127 = arith.sitofp %126 : vector<8x128xi32> to vector<8x128xf32>
    %128 = arith.mulf %123, %127 : vector<8x128xf32>
    %cst_49 = arith.constant 7.787000e+00 : f32
    %129 = vector.broadcast %cst_49 : f32 to vector<8x128xf32>
    %130 = arith.mulf %129, %115 : vector<8x128xf32>
    %cst_50 = arith.constant 1.379310e-01 : f32
    %131 = vector.broadcast %cst_50 : f32 to vector<8x128xf32>
    %132 = arith.addf %130, %131 : vector<8x128xf32>
    %cst_51 = arith.constant 1.000000e+00 : f32
    %133 = vector.broadcast %cst_51 : f32 to vector<8x128xf32>
    %134 = arith.subf %133, %127 : vector<8x128xf32>
    %135 = arith.mulf %132, %134 : vector<8x128xf32>
    %136 = arith.addf %128, %135 : vector<8x128xf32>
    %cst_52 = arith.constant 0.00999999977 : f32
    %137 = vector.broadcast %cst_52 : f32 to vector<8x128xf32>
    %138 = arith.mulf %100, %137 : vector<8x128xf32>
    %cst_53 = arith.constant 0.000000e+00 : f32
    %139 = vector.broadcast %cst_53 : f32 to vector<8x128xf32>
    %140 = arith.cmpf oeq, %138, %139 : vector<8x128xf32>
    %141 = arith.extui %140 : vector<8x128xi1> to vector<8x128xi32>
    %142 = arith.sitofp %141 : vector<8x128xi32> to vector<8x128xf32>
    %143 = arith.addf %138, %142 : vector<8x128xf32>
    %144 = math.log %143 : vector<8x128xf32>
    %cst_54 = arith.constant 3.000000e+00 : f32
    %145 = vector.broadcast %cst_54 : f32 to vector<8x128xf32>
    %146 = arith.divf %144, %145 : vector<8x128xf32>
    %147 = math.exp %146 : vector<8x128xf32>
    %cst_55 = arith.constant 1.000000e+00 : f32
    %148 = vector.broadcast %cst_55 : f32 to vector<8x128xf32>
    %149 = arith.subf %148, %142 : vector<8x128xf32>
    %150 = arith.mulf %147, %149 : vector<8x128xf32>
    %151 = arith.addf %150, %142 : vector<8x128xf32>
    %cst_56 = arith.constant 8.856000e-03 : f32
    %152 = vector.broadcast %cst_56 : f32 to vector<8x128xf32>
    %153 = arith.cmpf ogt, %143, %152 : vector<8x128xf32>
    %154 = arith.extui %153 : vector<8x128xi1> to vector<8x128xi32>
    %155 = arith.sitofp %154 : vector<8x128xi32> to vector<8x128xf32>
    %156 = arith.mulf %151, %155 : vector<8x128xf32>
    %cst_57 = arith.constant 7.787000e+00 : f32
    %157 = vector.broadcast %cst_57 : f32 to vector<8x128xf32>
    %158 = arith.mulf %157, %143 : vector<8x128xf32>
    %cst_58 = arith.constant 1.379310e-01 : f32
    %159 = vector.broadcast %cst_58 : f32 to vector<8x128xf32>
    %160 = arith.addf %158, %159 : vector<8x128xf32>
    %cst_59 = arith.constant 1.000000e+00 : f32
    %161 = vector.broadcast %cst_59 : f32 to vector<8x128xf32>
    %162 = arith.subf %161, %155 : vector<8x128xf32>
    %163 = arith.mulf %160, %162 : vector<8x128xf32>
    %164 = arith.addf %156, %163 : vector<8x128xf32>
    %cst_60 = arith.constant 0.00918408576 : f32
    %165 = vector.broadcast %cst_60 : f32 to vector<8x128xf32>
    %166 = arith.mulf %108, %165 : vector<8x128xf32>
    %cst_61 = arith.constant 0.000000e+00 : f32
    %167 = vector.broadcast %cst_61 : f32 to vector<8x128xf32>
    %168 = arith.cmpf oeq, %166, %167 : vector<8x128xf32>
    %169 = arith.extui %168 : vector<8x128xi1> to vector<8x128xi32>
    %170 = arith.sitofp %169 : vector<8x128xi32> to vector<8x128xf32>
    %171 = arith.addf %166, %170 : vector<8x128xf32>
    %172 = math.log %171 : vector<8x128xf32>
    %cst_62 = arith.constant 3.000000e+00 : f32
    %173 = vector.broadcast %cst_62 : f32 to vector<8x128xf32>
    %174 = arith.divf %172, %173 : vector<8x128xf32>
    %175 = math.exp %174 : vector<8x128xf32>
    %cst_63 = arith.constant 1.000000e+00 : f32
    %176 = vector.broadcast %cst_63 : f32 to vector<8x128xf32>
    %177 = arith.subf %176, %170 : vector<8x128xf32>
    %178 = arith.mulf %175, %177 : vector<8x128xf32>
    %179 = arith.addf %178, %170 : vector<8x128xf32>
    %cst_64 = arith.constant 8.856000e-03 : f32
    %180 = vector.broadcast %cst_64 : f32 to vector<8x128xf32>
    %181 = arith.cmpf ogt, %171, %180 : vector<8x128xf32>
    %182 = arith.extui %181 : vector<8x128xi1> to vector<8x128xi32>
    %183 = arith.sitofp %182 : vector<8x128xi32> to vector<8x128xf32>
    %184 = arith.mulf %179, %183 : vector<8x128xf32>
    %cst_65 = arith.constant 7.787000e+00 : f32
    %185 = vector.broadcast %cst_65 : f32 to vector<8x128xf32>
    %186 = arith.mulf %185, %171 : vector<8x128xf32>
    %cst_66 = arith.constant 1.379310e-01 : f32
    %187 = vector.broadcast %cst_66 : f32 to vector<8x128xf32>
    %188 = arith.addf %186, %187 : vector<8x128xf32>
    %cst_67 = arith.constant 1.000000e+00 : f32
    %189 = vector.broadcast %cst_67 : f32 to vector<8x128xf32>
    %190 = arith.subf %189, %183 : vector<8x128xf32>
    %191 = arith.mulf %188, %190 : vector<8x128xf32>
    %192 = arith.addf %184, %191 : vector<8x128xf32>
    %cst_68 = arith.constant 1.160000e+02 : f32
    %193 = vector.broadcast %cst_68 : f32 to vector<8x128xf32>
    %194 = arith.mulf %193, %164 : vector<8x128xf32>
    %cst_69 = arith.constant 1.600000e+01 : f32
    %195 = vector.broadcast %cst_69 : f32 to vector<8x128xf32>
    %196 = arith.subf %194, %195 : vector<8x128xf32>
    %197 = arith.subf %136, %164 : vector<8x128xf32>
    %cst_70 = arith.constant 5.000000e+02 : f32
    %198 = vector.broadcast %cst_70 : f32 to vector<8x128xf32>
    %199 = arith.mulf %198, %197 : vector<8x128xf32>
    %200 = arith.subf %164, %192 : vector<8x128xf32>
    %cst_71 = arith.constant 2.000000e+02 : f32
    %201 = vector.broadcast %cst_71 : f32 to vector<8x128xf32>
    %202 = arith.mulf %201, %200 : vector<8x128xf32>
    %cst_72 = arith.constant 5.500000e-02 : f32
    %203 = vector.broadcast %cst_72 : f32 to vector<8x128xf32>
    %204 = arith.addf %17, %203 : vector<8x128xf32>
    %cst_73 = arith.constant 1.055000e+00 : f32
    %205 = vector.broadcast %cst_73 : f32 to vector<8x128xf32>
    %206 = arith.divf %204, %205 : vector<8x128xf32>
    %207 = math.log %206 : vector<8x128xf32>
    %cst_74 = arith.constant 2.400000e+00 : f32
    %208 = vector.broadcast %cst_74 : f32 to vector<8x128xf32>
    %209 = arith.mulf %208, %207 : vector<8x128xf32>
    %210 = math.exp %209 : vector<8x128xf32>
    %cst_75 = arith.constant 1.292000e+01 : f32
    %211 = vector.broadcast %cst_75 : f32 to vector<8x128xf32>
    %212 = arith.divf %17, %211 : vector<8x128xf32>
    %cst_76 = arith.constant 4.050000e-02 : f32
    %213 = vector.broadcast %cst_76 : f32 to vector<8x128xf32>
    %214 = arith.cmpf ogt, %17, %213 : vector<8x128xf32>
    %215 = arith.extui %214 : vector<8x128xi1> to vector<8x128xi32>
    %216 = arith.sitofp %215 : vector<8x128xi32> to vector<8x128xf32>
    %217 = arith.mulf %216, %210 : vector<8x128xf32>
    %cst_77 = arith.constant 1.000000e+00 : f32
    %218 = vector.broadcast %cst_77 : f32 to vector<8x128xf32>
    %219 = arith.subf %218, %216 : vector<8x128xf32>
    %220 = arith.mulf %219, %212 : vector<8x128xf32>
    %221 = arith.addf %217, %220 : vector<8x128xf32>
    %cst_78 = arith.constant 1.000000e+02 : f32
    %222 = vector.broadcast %cst_78 : f32 to vector<8x128xf32>
    %223 = arith.mulf %222, %221 : vector<8x128xf32>
    %cst_79 = arith.constant 5.500000e-02 : f32
    %224 = vector.broadcast %cst_79 : f32 to vector<8x128xf32>
    %225 = arith.addf %19, %224 : vector<8x128xf32>
    %cst_80 = arith.constant 1.055000e+00 : f32
    %226 = vector.broadcast %cst_80 : f32 to vector<8x128xf32>
    %227 = arith.divf %225, %226 : vector<8x128xf32>
    %228 = math.log %227 : vector<8x128xf32>
    %cst_81 = arith.constant 2.400000e+00 : f32
    %229 = vector.broadcast %cst_81 : f32 to vector<8x128xf32>
    %230 = arith.mulf %229, %228 : vector<8x128xf32>
    %231 = math.exp %230 : vector<8x128xf32>
    %cst_82 = arith.constant 1.292000e+01 : f32
    %232 = vector.broadcast %cst_82 : f32 to vector<8x128xf32>
    %233 = arith.divf %19, %232 : vector<8x128xf32>
    %cst_83 = arith.constant 4.050000e-02 : f32
    %234 = vector.broadcast %cst_83 : f32 to vector<8x128xf32>
    %235 = arith.cmpf ogt, %19, %234 : vector<8x128xf32>
    %236 = arith.extui %235 : vector<8x128xi1> to vector<8x128xi32>
    %237 = arith.sitofp %236 : vector<8x128xi32> to vector<8x128xf32>
    %238 = arith.mulf %237, %231 : vector<8x128xf32>
    %cst_84 = arith.constant 1.000000e+00 : f32
    %239 = vector.broadcast %cst_84 : f32 to vector<8x128xf32>
    %240 = arith.subf %239, %237 : vector<8x128xf32>
    %241 = arith.mulf %240, %233 : vector<8x128xf32>
    %242 = arith.addf %238, %241 : vector<8x128xf32>
    %cst_85 = arith.constant 1.000000e+02 : f32
    %243 = vector.broadcast %cst_85 : f32 to vector<8x128xf32>
    %244 = arith.mulf %243, %242 : vector<8x128xf32>
    %cst_86 = arith.constant 5.500000e-02 : f32
    %245 = vector.broadcast %cst_86 : f32 to vector<8x128xf32>
    %246 = arith.addf %21, %245 : vector<8x128xf32>
    %cst_87 = arith.constant 1.055000e+00 : f32
    %247 = vector.broadcast %cst_87 : f32 to vector<8x128xf32>
    %248 = arith.divf %246, %247 : vector<8x128xf32>
    %249 = math.log %248 : vector<8x128xf32>
    %cst_88 = arith.constant 2.400000e+00 : f32
    %250 = vector.broadcast %cst_88 : f32 to vector<8x128xf32>
    %251 = arith.mulf %250, %249 : vector<8x128xf32>
    %252 = math.exp %251 : vector<8x128xf32>
    %cst_89 = arith.constant 1.292000e+01 : f32
    %253 = vector.broadcast %cst_89 : f32 to vector<8x128xf32>
    %254 = arith.divf %21, %253 : vector<8x128xf32>
    %cst_90 = arith.constant 4.050000e-02 : f32
    %255 = vector.broadcast %cst_90 : f32 to vector<8x128xf32>
    %256 = arith.cmpf ogt, %21, %255 : vector<8x128xf32>
    %257 = arith.extui %256 : vector<8x128xi1> to vector<8x128xi32>
    %258 = arith.sitofp %257 : vector<8x128xi32> to vector<8x128xf32>
    %259 = arith.mulf %258, %252 : vector<8x128xf32>
    %cst_91 = arith.constant 1.000000e+00 : f32
    %260 = vector.broadcast %cst_91 : f32 to vector<8x128xf32>
    %261 = arith.subf %260, %258 : vector<8x128xf32>
    %262 = arith.mulf %261, %254 : vector<8x128xf32>
    %263 = arith.addf %259, %262 : vector<8x128xf32>
    %cst_92 = arith.constant 1.000000e+02 : f32
    %264 = vector.broadcast %cst_92 : f32 to vector<8x128xf32>
    %265 = arith.mulf %264, %263 : vector<8x128xf32>
    %cst_93 = arith.constant 4.124000e-01 : f32
    %266 = vector.broadcast %cst_93 : f32 to vector<8x128xf32>
    %267 = arith.mulf %266, %223 : vector<8x128xf32>
    %cst_94 = arith.constant 3.576000e-01 : f32
    %268 = vector.broadcast %cst_94 : f32 to vector<8x128xf32>
    %269 = arith.mulf %268, %244 : vector<8x128xf32>
    %270 = arith.addf %267, %269 : vector<8x128xf32>
    %cst_95 = arith.constant 1.805000e-01 : f32
    %271 = vector.broadcast %cst_95 : f32 to vector<8x128xf32>
    %272 = arith.mulf %271, %265 : vector<8x128xf32>
    %273 = arith.addf %270, %272 : vector<8x128xf32>
    %cst_96 = arith.constant 2.126000e-01 : f32
    %274 = vector.broadcast %cst_96 : f32 to vector<8x128xf32>
    %275 = arith.mulf %274, %223 : vector<8x128xf32>
    %cst_97 = arith.constant 7.152000e-01 : f32
    %276 = vector.broadcast %cst_97 : f32 to vector<8x128xf32>
    %277 = arith.mulf %276, %244 : vector<8x128xf32>
    %278 = arith.addf %275, %277 : vector<8x128xf32>
    %cst_98 = arith.constant 7.220000e-02 : f32
    %279 = vector.broadcast %cst_98 : f32 to vector<8x128xf32>
    %280 = arith.mulf %279, %265 : vector<8x128xf32>
    %281 = arith.addf %278, %280 : vector<8x128xf32>
    %cst_99 = arith.constant 1.930000e-02 : f32
    %282 = vector.broadcast %cst_99 : f32 to vector<8x128xf32>
    %283 = arith.mulf %282, %223 : vector<8x128xf32>
    %cst_100 = arith.constant 1.192000e-01 : f32
    %284 = vector.broadcast %cst_100 : f32 to vector<8x128xf32>
    %285 = arith.mulf %284, %244 : vector<8x128xf32>
    %286 = arith.addf %283, %285 : vector<8x128xf32>
    %cst_101 = arith.constant 0.950399994 : f32
    %287 = vector.broadcast %cst_101 : f32 to vector<8x128xf32>
    %288 = arith.mulf %287, %265 : vector<8x128xf32>
    %289 = arith.addf %286, %288 : vector<8x128xf32>
    %cst_102 = arith.constant 0.0105209006 : f32
    %290 = vector.broadcast %cst_102 : f32 to vector<8x128xf32>
    %291 = arith.mulf %273, %290 : vector<8x128xf32>
    %cst_103 = arith.constant 0.000000e+00 : f32
    %292 = vector.broadcast %cst_103 : f32 to vector<8x128xf32>
    %293 = arith.cmpf oeq, %291, %292 : vector<8x128xf32>
    %294 = arith.extui %293 : vector<8x128xi1> to vector<8x128xi32>
    %295 = arith.sitofp %294 : vector<8x128xi32> to vector<8x128xf32>
    %296 = arith.addf %291, %295 : vector<8x128xf32>
    %297 = math.log %296 : vector<8x128xf32>
    %cst_104 = arith.constant 3.000000e+00 : f32
    %298 = vector.broadcast %cst_104 : f32 to vector<8x128xf32>
    %299 = arith.divf %297, %298 : vector<8x128xf32>
    %300 = math.exp %299 : vector<8x128xf32>
    %cst_105 = arith.constant 1.000000e+00 : f32
    %301 = vector.broadcast %cst_105 : f32 to vector<8x128xf32>
    %302 = arith.subf %301, %295 : vector<8x128xf32>
    %303 = arith.mulf %300, %302 : vector<8x128xf32>
    %304 = arith.addf %303, %295 : vector<8x128xf32>
    %cst_106 = arith.constant 8.856000e-03 : f32
    %305 = vector.broadcast %cst_106 : f32 to vector<8x128xf32>
    %306 = arith.cmpf ogt, %296, %305 : vector<8x128xf32>
    %307 = arith.extui %306 : vector<8x128xi1> to vector<8x128xi32>
    %308 = arith.sitofp %307 : vector<8x128xi32> to vector<8x128xf32>
    %309 = arith.mulf %304, %308 : vector<8x128xf32>
    %cst_107 = arith.constant 7.787000e+00 : f32
    %310 = vector.broadcast %cst_107 : f32 to vector<8x128xf32>
    %311 = arith.mulf %310, %296 : vector<8x128xf32>
    %cst_108 = arith.constant 1.379310e-01 : f32
    %312 = vector.broadcast %cst_108 : f32 to vector<8x128xf32>
    %313 = arith.addf %311, %312 : vector<8x128xf32>
    %cst_109 = arith.constant 1.000000e+00 : f32
    %314 = vector.broadcast %cst_109 : f32 to vector<8x128xf32>
    %315 = arith.subf %314, %308 : vector<8x128xf32>
    %316 = arith.mulf %313, %315 : vector<8x128xf32>
    %317 = arith.addf %309, %316 : vector<8x128xf32>
    %cst_110 = arith.constant 0.00999999977 : f32
    %318 = vector.broadcast %cst_110 : f32 to vector<8x128xf32>
    %319 = arith.mulf %281, %318 : vector<8x128xf32>
    %cst_111 = arith.constant 0.000000e+00 : f32
    %320 = vector.broadcast %cst_111 : f32 to vector<8x128xf32>
    %321 = arith.cmpf oeq, %319, %320 : vector<8x128xf32>
    %322 = arith.extui %321 : vector<8x128xi1> to vector<8x128xi32>
    %323 = arith.sitofp %322 : vector<8x128xi32> to vector<8x128xf32>
    %324 = arith.addf %319, %323 : vector<8x128xf32>
    %325 = math.log %324 : vector<8x128xf32>
    %cst_112 = arith.constant 3.000000e+00 : f32
    %326 = vector.broadcast %cst_112 : f32 to vector<8x128xf32>
    %327 = arith.divf %325, %326 : vector<8x128xf32>
    %328 = math.exp %327 : vector<8x128xf32>
    %cst_113 = arith.constant 1.000000e+00 : f32
    %329 = vector.broadcast %cst_113 : f32 to vector<8x128xf32>
    %330 = arith.subf %329, %323 : vector<8x128xf32>
    %331 = arith.mulf %328, %330 : vector<8x128xf32>
    %332 = arith.addf %331, %323 : vector<8x128xf32>
    %cst_114 = arith.constant 8.856000e-03 : f32
    %333 = vector.broadcast %cst_114 : f32 to vector<8x128xf32>
    %334 = arith.cmpf ogt, %324, %333 : vector<8x128xf32>
    %335 = arith.extui %334 : vector<8x128xi1> to vector<8x128xi32>
    %336 = arith.sitofp %335 : vector<8x128xi32> to vector<8x128xf32>
    %337 = arith.mulf %332, %336 : vector<8x128xf32>
    %cst_115 = arith.constant 7.787000e+00 : f32
    %338 = vector.broadcast %cst_115 : f32 to vector<8x128xf32>
    %339 = arith.mulf %338, %324 : vector<8x128xf32>
    %cst_116 = arith.constant 1.379310e-01 : f32
    %340 = vector.broadcast %cst_116 : f32 to vector<8x128xf32>
    %341 = arith.addf %339, %340 : vector<8x128xf32>
    %cst_117 = arith.constant 1.000000e+00 : f32
    %342 = vector.broadcast %cst_117 : f32 to vector<8x128xf32>
    %343 = arith.subf %342, %336 : vector<8x128xf32>
    %344 = arith.mulf %341, %343 : vector<8x128xf32>
    %345 = arith.addf %337, %344 : vector<8x128xf32>
    %cst_118 = arith.constant 0.00918408576 : f32
    %346 = vector.broadcast %cst_118 : f32 to vector<8x128xf32>
    %347 = arith.mulf %289, %346 : vector<8x128xf32>
    %cst_119 = arith.constant 0.000000e+00 : f32
    %348 = vector.broadcast %cst_119 : f32 to vector<8x128xf32>
    %349 = arith.cmpf oeq, %347, %348 : vector<8x128xf32>
    %350 = arith.extui %349 : vector<8x128xi1> to vector<8x128xi32>
    %351 = arith.sitofp %350 : vector<8x128xi32> to vector<8x128xf32>
    %352 = arith.addf %347, %351 : vector<8x128xf32>
    %353 = math.log %352 : vector<8x128xf32>
    %cst_120 = arith.constant 3.000000e+00 : f32
    %354 = vector.broadcast %cst_120 : f32 to vector<8x128xf32>
    %355 = arith.divf %353, %354 : vector<8x128xf32>
    %356 = math.exp %355 : vector<8x128xf32>
    %cst_121 = arith.constant 1.000000e+00 : f32
    %357 = vector.broadcast %cst_121 : f32 to vector<8x128xf32>
    %358 = arith.subf %357, %351 : vector<8x128xf32>
    %359 = arith.mulf %356, %358 : vector<8x128xf32>
    %360 = arith.addf %359, %351 : vector<8x128xf32>
    %cst_122 = arith.constant 8.856000e-03 : f32
    %361 = vector.broadcast %cst_122 : f32 to vector<8x128xf32>
    %362 = arith.cmpf ogt, %352, %361 : vector<8x128xf32>
    %363 = arith.extui %362 : vector<8x128xi1> to vector<8x128xi32>
    %364 = arith.sitofp %363 : vector<8x128xi32> to vector<8x128xf32>
    %365 = arith.mulf %360, %364 : vector<8x128xf32>
    %cst_123 = arith.constant 7.787000e+00 : f32
    %366 = vector.broadcast %cst_123 : f32 to vector<8x128xf32>
    %367 = arith.mulf %366, %352 : vector<8x128xf32>
    %cst_124 = arith.constant 1.379310e-01 : f32
    %368 = vector.broadcast %cst_124 : f32 to vector<8x128xf32>
    %369 = arith.addf %367, %368 : vector<8x128xf32>
    %cst_125 = arith.constant 1.000000e+00 : f32
    %370 = vector.broadcast %cst_125 : f32 to vector<8x128xf32>
    %371 = arith.subf %370, %364 : vector<8x128xf32>
    %372 = arith.mulf %369, %371 : vector<8x128xf32>
    %373 = arith.addf %365, %372 : vector<8x128xf32>
    %cst_126 = arith.constant 1.160000e+02 : f32
    %374 = vector.broadcast %cst_126 : f32 to vector<8x128xf32>
    %375 = arith.mulf %374, %345 : vector<8x128xf32>
    %cst_127 = arith.constant 1.600000e+01 : f32
    %376 = vector.broadcast %cst_127 : f32 to vector<8x128xf32>
    %377 = arith.subf %375, %376 : vector<8x128xf32>
    %378 = arith.subf %317, %345 : vector<8x128xf32>
    %cst_128 = arith.constant 5.000000e+02 : f32
    %379 = vector.broadcast %cst_128 : f32 to vector<8x128xf32>
    %380 = arith.mulf %379, %378 : vector<8x128xf32>
    %381 = arith.subf %345, %373 : vector<8x128xf32>
    %cst_129 = arith.constant 2.000000e+02 : f32
    %382 = vector.broadcast %cst_129 : f32 to vector<8x128xf32>
    %383 = arith.mulf %382, %381 : vector<8x128xf32>
    %cst_130 = arith.constant 0.000000e+00 : f32
    %384 = vector.broadcast %cst_130 : f32 to vector<8x128xf32>
    %385 = arith.cmpf oeq, %380, %384 : vector<8x128xf32>
    %cst_131 = arith.constant 0.000000e+00 : f32
    %386 = vector.broadcast %cst_131 : f32 to vector<8x128xf32>
    %387 = arith.cmpf oeq, %383, %386 : vector<8x128xf32>
    %388 = arith.andi %385, %387 : vector<8x128xi1>
    %389 = arith.extui %388 : vector<8x128xi1> to vector<8x128xi32>
    %390 = arith.sitofp %389 : vector<8x128xi32> to vector<8x128xf32>
    %cst_132 = arith.constant 0.000000e+00 : f32
    %391 = vector.broadcast %cst_132 : f32 to vector<8x128xf32>
    %392 = arith.cmpf oeq, %199, %391 : vector<8x128xf32>
    %cst_133 = arith.constant 0.000000e+00 : f32
    %393 = vector.broadcast %cst_133 : f32 to vector<8x128xf32>
    %394 = arith.cmpf oeq, %202, %393 : vector<8x128xf32>
    %395 = arith.andi %392, %394 : vector<8x128xi1>
    %396 = arith.extui %395 : vector<8x128xi1> to vector<8x128xi32>
    %397 = arith.sitofp %396 : vector<8x128xi32> to vector<8x128xf32>
    %cst_134 = arith.constant 9.99999974E-5 : f32
    %398 = vector.broadcast %cst_134 : f32 to vector<8x128xf32>
    %399 = arith.mulf %398, %390 : vector<8x128xf32>
    %400 = arith.addf %383, %399 : vector<8x128xf32>
    %cst_135 = arith.constant 9.99999974E-5 : f32
    %401 = vector.broadcast %cst_135 : f32 to vector<8x128xf32>
    %402 = arith.mulf %401, %397 : vector<8x128xf32>
    %403 = arith.addf %202, %402 : vector<8x128xf32>
    %404 = arith.mulf %380, %380 : vector<8x128xf32>
    %405 = arith.mulf %400, %400 : vector<8x128xf32>
    %406 = arith.addf %404, %405 : vector<8x128xf32>
    %407 = math.sqrt %406 : vector<8x128xf32>
    %408 = arith.mulf %199, %199 : vector<8x128xf32>
    %409 = arith.mulf %403, %403 : vector<8x128xf32>
    %410 = arith.addf %408, %409 : vector<8x128xf32>
    %411 = math.sqrt %410 : vector<8x128xf32>
    %412 = arith.addf %407, %411 : vector<8x128xf32>
    %cst_136 = arith.constant 5.000000e-01 : f32
    %413 = vector.broadcast %cst_136 : f32 to vector<8x128xf32>
    %414 = arith.mulf %412, %413 : vector<8x128xf32>
    %415 = arith.mulf %414, %414 : vector<8x128xf32>
    %416 = arith.mulf %415, %414 : vector<8x128xf32>
    %417 = arith.mulf %416, %416 : vector<8x128xf32>
    %418 = arith.mulf %417, %414 : vector<8x128xf32>
    %cst_137 = arith.constant 6.10351565E+9 : f32
    %419 = vector.broadcast %cst_137 : f32 to vector<8x128xf32>
    %420 = arith.addf %418, %419 : vector<8x128xf32>
    %421 = arith.divf %418, %420 : vector<8x128xf32>
    %422 = math.sqrt %421 : vector<8x128xf32>
    %cst_138 = arith.constant 1.000000e+00 : f32
    %423 = vector.broadcast %cst_138 : f32 to vector<8x128xf32>
    %424 = arith.subf %423, %422 : vector<8x128xf32>
    %cst_139 = arith.constant 5.000000e-01 : f32
    %425 = vector.broadcast %cst_139 : f32 to vector<8x128xf32>
    %426 = arith.mulf %425, %424 : vector<8x128xf32>
    %cst_140 = arith.constant 1.000000e+00 : f32
    %427 = vector.broadcast %cst_140 : f32 to vector<8x128xf32>
    %428 = arith.addf %427, %426 : vector<8x128xf32>
    %429 = arith.mulf %428, %380 : vector<8x128xf32>
    %cst_141 = arith.constant 1.000000e+00 : f32
    %430 = vector.broadcast %cst_141 : f32 to vector<8x128xf32>
    %431 = arith.addf %430, %426 : vector<8x128xf32>
    %432 = arith.mulf %431, %199 : vector<8x128xf32>
    %433 = arith.mulf %429, %429 : vector<8x128xf32>
    %434 = arith.mulf %400, %400 : vector<8x128xf32>
    %435 = arith.addf %433, %434 : vector<8x128xf32>
    %436 = math.sqrt %435 : vector<8x128xf32>
    %437 = arith.mulf %432, %432 : vector<8x128xf32>
    %438 = arith.mulf %403, %403 : vector<8x128xf32>
    %439 = arith.addf %437, %438 : vector<8x128xf32>
    %440 = math.sqrt %439 : vector<8x128xf32>
    %cst_142 = arith.constant 0.000000e+00 : f32
    %441 = vector.broadcast %cst_142 : f32 to vector<8x128xf32>
    %442 = arith.cmpf oeq, %400, %441 : vector<8x128xf32>
    %cst_143 = arith.constant 0.000000e+00 : f32
    %443 = vector.broadcast %cst_143 : f32 to vector<8x128xf32>
    %444 = arith.cmpf oeq, %429, %443 : vector<8x128xf32>
    %445 = arith.andi %442, %444 : vector<8x128xi1>
    %446 = arith.extui %445 : vector<8x128xi1> to vector<8x128xi32>
    %447 = arith.sitofp %446 : vector<8x128xi32> to vector<8x128xf32>
    %cst_144 = arith.constant 1.000000e+00 : f32
    %448 = vector.broadcast %cst_144 : f32 to vector<8x128xf32>
    %449 = arith.subf %448, %447 : vector<8x128xf32>
    %450 = arith.mulf %400, %449 : vector<8x128xf32>
    %451 = arith.mulf %429, %449 : vector<8x128xf32>
    %452 = math.atan2 %450, %451 : vector<8x128xf32>
    %cst_145 = arith.constant 57.2957802 : f32
    %453 = vector.broadcast %cst_145 : f32 to vector<8x128xf32>
    %454 = arith.mulf %452, %453 : vector<8x128xf32>
    %cst_146 = arith.constant 0.000000e+00 : f32
    %455 = vector.broadcast %cst_146 : f32 to vector<8x128xf32>
    %456 = arith.cmpf oge, %454, %455 : vector<8x128xf32>
    %457 = arith.extui %456 : vector<8x128xi1> to vector<8x128xi32>
    %458 = arith.sitofp %457 : vector<8x128xi32> to vector<8x128xf32>
    %459 = arith.mulf %454, %458 : vector<8x128xf32>
    %cst_147 = arith.constant 3.600000e+02 : f32
    %460 = vector.broadcast %cst_147 : f32 to vector<8x128xf32>
    %461 = arith.addf %460, %454 : vector<8x128xf32>
    %cst_148 = arith.constant 0.000000e+00 : f32
    %462 = vector.broadcast %cst_148 : f32 to vector<8x128xf32>
    %463 = arith.cmpf olt, %454, %462 : vector<8x128xf32>
    %464 = arith.extui %463 : vector<8x128xi1> to vector<8x128xi32>
    %465 = arith.sitofp %464 : vector<8x128xi32> to vector<8x128xf32>
    %466 = arith.mulf %461, %465 : vector<8x128xf32>
    %467 = arith.addf %459, %466 : vector<8x128xf32>
    %cst_149 = arith.constant 1.000000e+00 : f32
    %468 = vector.broadcast %cst_149 : f32 to vector<8x128xf32>
    %469 = arith.subf %468, %390 : vector<8x128xf32>
    %470 = arith.mulf %467, %469 : vector<8x128xf32>
    %cst_150 = arith.constant 0.000000e+00 : f32
    %471 = vector.broadcast %cst_150 : f32 to vector<8x128xf32>
    %472 = arith.cmpf oeq, %403, %471 : vector<8x128xf32>
    %cst_151 = arith.constant 0.000000e+00 : f32
    %473 = vector.broadcast %cst_151 : f32 to vector<8x128xf32>
    %474 = arith.cmpf oeq, %432, %473 : vector<8x128xf32>
    %475 = arith.andi %472, %474 : vector<8x128xi1>
    %476 = arith.extui %475 : vector<8x128xi1> to vector<8x128xi32>
    %477 = arith.sitofp %476 : vector<8x128xi32> to vector<8x128xf32>
    %cst_152 = arith.constant 1.000000e+00 : f32
    %478 = vector.broadcast %cst_152 : f32 to vector<8x128xf32>
    %479 = arith.subf %478, %477 : vector<8x128xf32>
    %480 = arith.mulf %403, %479 : vector<8x128xf32>
    %481 = arith.mulf %432, %479 : vector<8x128xf32>
    %482 = math.atan2 %480, %481 : vector<8x128xf32>
    %cst_153 = arith.constant 57.2957802 : f32
    %483 = vector.broadcast %cst_153 : f32 to vector<8x128xf32>
    %484 = arith.mulf %482, %483 : vector<8x128xf32>
    %cst_154 = arith.constant 0.000000e+00 : f32
    %485 = vector.broadcast %cst_154 : f32 to vector<8x128xf32>
    %486 = arith.cmpf oge, %484, %485 : vector<8x128xf32>
    %487 = arith.extui %486 : vector<8x128xi1> to vector<8x128xi32>
    %488 = arith.sitofp %487 : vector<8x128xi32> to vector<8x128xf32>
    %489 = arith.mulf %484, %488 : vector<8x128xf32>
    %cst_155 = arith.constant 3.600000e+02 : f32
    %490 = vector.broadcast %cst_155 : f32 to vector<8x128xf32>
    %491 = arith.addf %490, %484 : vector<8x128xf32>
    %cst_156 = arith.constant 0.000000e+00 : f32
    %492 = vector.broadcast %cst_156 : f32 to vector<8x128xf32>
    %493 = arith.cmpf olt, %484, %492 : vector<8x128xf32>
    %494 = arith.extui %493 : vector<8x128xi1> to vector<8x128xi32>
    %495 = arith.sitofp %494 : vector<8x128xi32> to vector<8x128xf32>
    %496 = arith.mulf %491, %495 : vector<8x128xf32>
    %497 = arith.addf %489, %496 : vector<8x128xf32>
    %cst_157 = arith.constant 1.000000e+00 : f32
    %498 = vector.broadcast %cst_157 : f32 to vector<8x128xf32>
    %499 = arith.subf %498, %397 : vector<8x128xf32>
    %500 = arith.mulf %497, %499 : vector<8x128xf32>
    %501 = arith.subf %196, %377 : vector<8x128xf32>
    %502 = arith.subf %440, %436 : vector<8x128xf32>
    %503 = arith.mulf %407, %411 : vector<8x128xf32>
    %cst_158 = arith.constant 0.000000e+00 : f32
    %504 = vector.broadcast %cst_158 : f32 to vector<8x128xf32>
    %505 = arith.cmpf oeq, %503, %504 : vector<8x128xf32>
    %506 = arith.extui %505 : vector<8x128xi1> to vector<8x128xi32>
    %507 = arith.sitofp %506 : vector<8x128xi32> to vector<8x128xf32>
    %cst_159 = arith.constant 1.000000e+00 : f32
    %508 = vector.broadcast %cst_159 : f32 to vector<8x128xf32>
    %509 = arith.subf %508, %507 : vector<8x128xf32>
    %510 = arith.subf %500, %470 : vector<8x128xf32>
    %511 = arith.mulf %510, %509 : vector<8x128xf32>
    %512 = math.absf %510 : vector<8x128xf32>
    %cst_160 = arith.constant 1.800000e+02 : f32
    %513 = vector.broadcast %cst_160 : f32 to vector<8x128xf32>
    %514 = arith.cmpf ole, %512, %513 : vector<8x128xf32>
    %515 = arith.extui %514 : vector<8x128xi1> to vector<8x128xi32>
    %516 = arith.sitofp %515 : vector<8x128xi32> to vector<8x128xf32>
    %517 = arith.mulf %511, %516 : vector<8x128xf32>
    %cst_161 = arith.constant 3.600000e+02 : f32
    %518 = vector.broadcast %cst_161 : f32 to vector<8x128xf32>
    %519 = arith.subf %510, %518 : vector<8x128xf32>
    %cst_162 = arith.constant 1.800000e+02 : f32
    %520 = vector.broadcast %cst_162 : f32 to vector<8x128xf32>
    %521 = arith.cmpf ogt, %510, %520 : vector<8x128xf32>
    %522 = arith.extui %521 : vector<8x128xi1> to vector<8x128xi32>
    %523 = arith.sitofp %522 : vector<8x128xi32> to vector<8x128xf32>
    %524 = arith.mulf %519, %523 : vector<8x128xf32>
    %525 = arith.mulf %524, %509 : vector<8x128xf32>
    %cst_163 = arith.constant 3.600000e+02 : f32
    %526 = vector.broadcast %cst_163 : f32 to vector<8x128xf32>
    %527 = arith.addf %510, %526 : vector<8x128xf32>
    %cst_164 = arith.constant -1.800000e+02 : f32
    %528 = vector.broadcast %cst_164 : f32 to vector<8x128xf32>
    %529 = arith.cmpf olt, %510, %528 : vector<8x128xf32>
    %530 = arith.extui %529 : vector<8x128xi1> to vector<8x128xi32>
    %531 = arith.sitofp %530 : vector<8x128xi32> to vector<8x128xf32>
    %532 = arith.mulf %527, %531 : vector<8x128xf32>
    %533 = arith.mulf %532, %509 : vector<8x128xf32>
    %534 = arith.addf %517, %525 : vector<8x128xf32>
    %535 = arith.addf %534, %533 : vector<8x128xf32>
    %536 = arith.mulf %436, %440 : vector<8x128xf32>
    %537 = math.sqrt %536 : vector<8x128xf32>
    %cst_165 = arith.constant 2.000000e+00 : f32
    %538 = vector.broadcast %cst_165 : f32 to vector<8x128xf32>
    %539 = arith.mulf %538, %537 : vector<8x128xf32>
    %cst_166 = arith.constant 0.00872664619 : f32
    %540 = vector.broadcast %cst_166 : f32 to vector<8x128xf32>
    %541 = arith.mulf %535, %540 : vector<8x128xf32>
    %542 = math.sin %541 : vector<8x128xf32>
    %543 = arith.mulf %539, %542 : vector<8x128xf32>
    %544 = arith.maximumf %390, %397 : vector<8x128xf32>
    %cst_167 = arith.constant 1.000000e+00 : f32
    %545 = vector.broadcast %cst_167 : f32 to vector<8x128xf32>
    %546 = arith.subf %545, %544 : vector<8x128xf32>
    %547 = arith.mulf %543, %546 : vector<8x128xf32>
    %548 = arith.addf %377, %196 : vector<8x128xf32>
    %cst_168 = arith.constant 5.000000e-01 : f32
    %549 = vector.broadcast %cst_168 : f32 to vector<8x128xf32>
    %550 = arith.mulf %548, %549 : vector<8x128xf32>
    %551 = arith.addf %436, %440 : vector<8x128xf32>
    %cst_169 = arith.constant 5.000000e-01 : f32
    %552 = vector.broadcast %cst_169 : f32 to vector<8x128xf32>
    %553 = arith.mulf %551, %552 : vector<8x128xf32>
    %554 = arith.mulf %407, %411 : vector<8x128xf32>
    %cst_170 = arith.constant 0.000000e+00 : f32
    %555 = vector.broadcast %cst_170 : f32 to vector<8x128xf32>
    %556 = arith.cmpf oeq, %554, %555 : vector<8x128xf32>
    %557 = arith.extui %556 : vector<8x128xi1> to vector<8x128xi32>
    %558 = arith.sitofp %557 : vector<8x128xi32> to vector<8x128xf32>
    %cst_171 = arith.constant 1.000000e+00 : f32
    %559 = vector.broadcast %cst_171 : f32 to vector<8x128xf32>
    %560 = arith.subf %559, %558 : vector<8x128xf32>
    %561 = arith.subf %500, %470 : vector<8x128xf32>
    %562 = math.absf %561 : vector<8x128xf32>
    %cst_172 = arith.constant 1.800000e+02 : f32
    %563 = vector.broadcast %cst_172 : f32 to vector<8x128xf32>
    %564 = arith.cmpf ole, %562, %563 : vector<8x128xf32>
    %565 = arith.extui %564 : vector<8x128xi1> to vector<8x128xi32>
    %566 = arith.sitofp %565 : vector<8x128xi32> to vector<8x128xf32>
    %cst_173 = arith.constant 1.000000e+00 : f32
    %567 = vector.broadcast %cst_173 : f32 to vector<8x128xf32>
    %568 = arith.subf %567, %566 : vector<8x128xf32>
    %569 = arith.addf %500, %470 : vector<8x128xf32>
    %570 = math.absf %569 : vector<8x128xf32>
    %cst_174 = arith.constant 3.600000e+02 : f32
    %571 = vector.broadcast %cst_174 : f32 to vector<8x128xf32>
    %572 = arith.cmpf olt, %570, %571 : vector<8x128xf32>
    %573 = arith.extui %572 : vector<8x128xi1> to vector<8x128xi32>
    %574 = arith.sitofp %573 : vector<8x128xi32> to vector<8x128xf32>
    %cst_175 = arith.constant 1.000000e+00 : f32
    %575 = vector.broadcast %cst_175 : f32 to vector<8x128xf32>
    %576 = arith.subf %575, %574 : vector<8x128xf32>
    %577 = arith.addf %470, %500 : vector<8x128xf32>
    %578 = arith.mulf %577, %560 : vector<8x128xf32>
    %579 = arith.mulf %578, %566 : vector<8x128xf32>
    %cst_176 = arith.constant 3.600000e+02 : f32
    %580 = vector.broadcast %cst_176 : f32 to vector<8x128xf32>
    %581 = arith.addf %577, %580 : vector<8x128xf32>
    %582 = arith.mulf %581, %560 : vector<8x128xf32>
    %583 = arith.mulf %582, %568 : vector<8x128xf32>
    %584 = arith.mulf %583, %574 : vector<8x128xf32>
    %585 = arith.addf %579, %584 : vector<8x128xf32>
    %cst_177 = arith.constant 3.600000e+02 : f32
    %586 = vector.broadcast %cst_177 : f32 to vector<8x128xf32>
    %587 = arith.subf %577, %586 : vector<8x128xf32>
    %588 = arith.mulf %587, %560 : vector<8x128xf32>
    %589 = arith.mulf %588, %568 : vector<8x128xf32>
    %590 = arith.mulf %589, %576 : vector<8x128xf32>
    %591 = arith.addf %585, %590 : vector<8x128xf32>
    %592 = arith.mulf %591, %558 : vector<8x128xf32>
    %593 = arith.addf %591, %592 : vector<8x128xf32>
    %cst_178 = arith.constant 5.000000e-01 : f32
    %594 = vector.broadcast %cst_178 : f32 to vector<8x128xf32>
    %595 = arith.mulf %593, %594 : vector<8x128xf32>
    %cst_179 = arith.constant 3.900000e+01 : f32
    %596 = vector.broadcast %cst_179 : f32 to vector<8x128xf32>
    %597 = arith.subf %595, %596 : vector<8x128xf32>
    %cst_180 = arith.constant 0.0174532924 : f32
    %598 = vector.broadcast %cst_180 : f32 to vector<8x128xf32>
    %599 = arith.mulf %597, %598 : vector<8x128xf32>
    %600 = math.cos %599 : vector<8x128xf32>
    %cst_181 = arith.constant 1.700000e-01 : f32
    %601 = vector.broadcast %cst_181 : f32 to vector<8x128xf32>
    %602 = arith.mulf %601, %600 : vector<8x128xf32>
    %cst_182 = arith.constant 1.000000e+00 : f32
    %603 = vector.broadcast %cst_182 : f32 to vector<8x128xf32>
    %604 = arith.subf %603, %602 : vector<8x128xf32>
    %cst_183 = arith.constant 2.000000e+00 : f32
    %605 = vector.broadcast %cst_183 : f32 to vector<8x128xf32>
    %606 = arith.mulf %605, %595 : vector<8x128xf32>
    %cst_184 = arith.constant 0.0174532924 : f32
    %607 = vector.broadcast %cst_184 : f32 to vector<8x128xf32>
    %608 = arith.mulf %606, %607 : vector<8x128xf32>
    %609 = math.cos %608 : vector<8x128xf32>
    %cst_185 = arith.constant 2.400000e-01 : f32
    %610 = vector.broadcast %cst_185 : f32 to vector<8x128xf32>
    %611 = arith.mulf %610, %609 : vector<8x128xf32>
    %612 = arith.addf %604, %611 : vector<8x128xf32>
    %cst_186 = arith.constant 3.000000e+00 : f32
    %613 = vector.broadcast %cst_186 : f32 to vector<8x128xf32>
    %614 = arith.mulf %613, %595 : vector<8x128xf32>
    %cst_187 = arith.constant 6.000000e+00 : f32
    %615 = vector.broadcast %cst_187 : f32 to vector<8x128xf32>
    %616 = arith.addf %614, %615 : vector<8x128xf32>
    %cst_188 = arith.constant 0.0174532924 : f32
    %617 = vector.broadcast %cst_188 : f32 to vector<8x128xf32>
    %618 = arith.mulf %616, %617 : vector<8x128xf32>
    %619 = math.cos %618 : vector<8x128xf32>
    %cst_189 = arith.constant 3.200000e-01 : f32
    %620 = vector.broadcast %cst_189 : f32 to vector<8x128xf32>
    %621 = arith.mulf %620, %619 : vector<8x128xf32>
    %622 = arith.addf %612, %621 : vector<8x128xf32>
    %cst_190 = arith.constant 4.000000e+00 : f32
    %623 = vector.broadcast %cst_190 : f32 to vector<8x128xf32>
    %624 = arith.mulf %623, %595 : vector<8x128xf32>
    %cst_191 = arith.constant 6.300000e+01 : f32
    %625 = vector.broadcast %cst_191 : f32 to vector<8x128xf32>
    %626 = arith.subf %624, %625 : vector<8x128xf32>
    %cst_192 = arith.constant 0.0174532924 : f32
    %627 = vector.broadcast %cst_192 : f32 to vector<8x128xf32>
    %628 = arith.mulf %626, %627 : vector<8x128xf32>
    %629 = math.cos %628 : vector<8x128xf32>
    %cst_193 = arith.constant 2.000000e-01 : f32
    %630 = vector.broadcast %cst_193 : f32 to vector<8x128xf32>
    %631 = arith.mulf %630, %629 : vector<8x128xf32>
    %632 = arith.subf %622, %631 : vector<8x128xf32>
    %cst_194 = arith.constant 2.750000e+02 : f32
    %633 = vector.broadcast %cst_194 : f32 to vector<8x128xf32>
    %634 = arith.subf %595, %633 : vector<8x128xf32>
    %cst_195 = arith.constant 2.500000e+01 : f32
    %635 = vector.broadcast %cst_195 : f32 to vector<8x128xf32>
    %636 = arith.divf %634, %635 : vector<8x128xf32>
    %637 = arith.mulf %636, %636 : vector<8x128xf32>
    %cst_196 = arith.constant 0.000000e+00 : f32
    %638 = vector.broadcast %cst_196 : f32 to vector<8x128xf32>
    %639 = arith.subf %638, %637 : vector<8x128xf32>
    %640 = math.exp %639 : vector<8x128xf32>
    %cst_197 = arith.constant 3.000000e+01 : f32
    %641 = vector.broadcast %cst_197 : f32 to vector<8x128xf32>
    %642 = arith.mulf %641, %640 : vector<8x128xf32>
    %643 = arith.mulf %553, %553 : vector<8x128xf32>
    %644 = arith.mulf %643, %553 : vector<8x128xf32>
    %645 = arith.mulf %644, %644 : vector<8x128xf32>
    %646 = arith.mulf %645, %553 : vector<8x128xf32>
    %cst_198 = arith.constant 6.10351565E+9 : f32
    %647 = vector.broadcast %cst_198 : f32 to vector<8x128xf32>
    %648 = arith.addf %646, %647 : vector<8x128xf32>
    %649 = arith.divf %646, %648 : vector<8x128xf32>
    %650 = math.sqrt %649 : vector<8x128xf32>
    %cst_199 = arith.constant 5.000000e+01 : f32
    %651 = vector.broadcast %cst_199 : f32 to vector<8x128xf32>
    %652 = arith.subf %550, %651 : vector<8x128xf32>
    %653 = arith.mulf %652, %652 : vector<8x128xf32>
    %cst_200 = arith.constant 1.500000e-02 : f32
    %654 = vector.broadcast %cst_200 : f32 to vector<8x128xf32>
    %655 = arith.mulf %654, %653 : vector<8x128xf32>
    %cst_201 = arith.constant 2.000000e+01 : f32
    %656 = vector.broadcast %cst_201 : f32 to vector<8x128xf32>
    %657 = arith.addf %656, %653 : vector<8x128xf32>
    %658 = math.sqrt %657 : vector<8x128xf32>
    %659 = arith.divf %655, %658 : vector<8x128xf32>
    %cst_202 = arith.constant 1.000000e+00 : f32
    %660 = vector.broadcast %cst_202 : f32 to vector<8x128xf32>
    %661 = arith.addf %660, %659 : vector<8x128xf32>
    %cst_203 = arith.constant 4.500000e-02 : f32
    %662 = vector.broadcast %cst_203 : f32 to vector<8x128xf32>
    %663 = arith.mulf %662, %553 : vector<8x128xf32>
    %cst_204 = arith.constant 1.000000e+00 : f32
    %664 = vector.broadcast %cst_204 : f32 to vector<8x128xf32>
    %665 = arith.addf %664, %663 : vector<8x128xf32>
    %cst_205 = arith.constant 1.500000e-02 : f32
    %666 = vector.broadcast %cst_205 : f32 to vector<8x128xf32>
    %667 = arith.mulf %666, %553 : vector<8x128xf32>
    %668 = arith.mulf %667, %632 : vector<8x128xf32>
    %cst_206 = arith.constant 1.000000e+00 : f32
    %669 = vector.broadcast %cst_206 : f32 to vector<8x128xf32>
    %670 = arith.addf %669, %668 : vector<8x128xf32>
    %cst_207 = arith.constant -2.000000e+00 : f32
    %671 = vector.broadcast %cst_207 : f32 to vector<8x128xf32>
    %672 = arith.mulf %671, %650 : vector<8x128xf32>
    %cst_208 = arith.constant 2.000000e+00 : f32
    %673 = vector.broadcast %cst_208 : f32 to vector<8x128xf32>
    %674 = arith.mulf %673, %642 : vector<8x128xf32>
    %cst_209 = arith.constant 0.0174532924 : f32
    %675 = vector.broadcast %cst_209 : f32 to vector<8x128xf32>
    %676 = arith.mulf %674, %675 : vector<8x128xf32>
    %677 = math.sin %676 : vector<8x128xf32>
    %678 = arith.mulf %672, %677 : vector<8x128xf32>
    %679 = arith.divf %501, %661 : vector<8x128xf32>
    %680 = arith.divf %502, %665 : vector<8x128xf32>
    %681 = arith.divf %547, %670 : vector<8x128xf32>
    %682 = arith.mulf %679, %679 : vector<8x128xf32>
    %683 = arith.mulf %680, %680 : vector<8x128xf32>
    %684 = arith.mulf %681, %681 : vector<8x128xf32>
    %685 = arith.addf %683, %684 : vector<8x128xf32>
    %686 = arith.mulf %678, %680 : vector<8x128xf32>
    %687 = arith.mulf %686, %681 : vector<8x128xf32>
    %688 = arith.addf %685, %687 : vector<8x128xf32>
    %689 = arith.mulf %688, %546 : vector<8x128xf32>
    %690 = arith.addf %682, %689 : vector<8x128xf32>
    %cst_210 = arith.constant 0.000000e+00 : f32
    %691 = vector.broadcast %cst_210 : f32 to vector<8x128xf32>
    %692 = arith.cmpf ole, %690, %691 : vector<8x128xf32>
    %693 = arith.extui %692 : vector<8x128xi1> to vector<8x128xi32>
    %694 = arith.sitofp %693 : vector<8x128xi32> to vector<8x128xf32>
    %cst_211 = arith.constant 9.99999974E-5 : f32
    %695 = vector.broadcast %cst_211 : f32 to vector<8x128xf32>
    %696 = arith.mulf %695, %694 : vector<8x128xf32>
    %697 = arith.addf %690, %696 : vector<8x128xf32>
    %698 = math.sqrt %697 : vector<8x128xf32>
    %cst_212 = arith.constant 1.000000e+00 : f32
    %699 = vector.broadcast %cst_212 : f32 to vector<8x128xf32>
    %700 = arith.subf %699, %694 : vector<8x128xf32>
    %701 = arith.mulf %698, %700 : vector<8x128xf32>
    %cst_213 = arith.constant 0.000000e+00 : f32
    %702 = vector.broadcast %cst_213 : f32 to vector<8x128xf32>
    %703 = arith.select %9, %701, %702 : vector<8x128xi1>, vector<8x128xf32>
    %cst_214 = arith.constant dense<0.000000e+00> : vector<128xf32>
    %704 = vector.multi_reduction <add>, %703, %cst_214 [0] : vector<8x128xf32> to vector<128xf32>
    %705 = vector.shape_cast %704 : vector<128xf32> to vector<1x128xf32>
    %706 = vector.shape_cast %705 : vector<1x128xf32> to vector<1x1x128xf32>
    %c0_215 = arith.constant 0 : index
    %c0_216 = arith.constant 0 : index
    %c0_217 = arith.constant 0 : index
    %707 = vector.load %arg3[%c0_215, %c0_216, %c0_217] : memref<1x1x128xf32, #tpu.memory_space<vmem>>, vector<1x1x128xf32>
    tpu.vector_store %arg3[%c0_215, %c0_216, %c0_217], %706 {strides = array<i32>} : memref<1x1x128xf32, #tpu.memory_space<vmem>>, vector<1x1x128xf32>,
    return
  }
  func.func @transform_0(%arg0: i32) -> (i32, i32, i32) {
    %c0_i32 = arith.constant 0 : i32
    %c0_i32_0 = arith.constant 0 : i32
    %c0_i32_1 = arith.constant 0 : i32
    return %c0_i32, %arg0, %c0_i32_0 : i32, i32, i32
  }
  func.func @transform_1(%arg0: i32) -> (i32, i32, i32) {
    %c0_i32 = arith.constant 0 : i32
    %c0_i32_0 = arith.constant 0 : i32
    %c0_i32_1 = arith.constant 0 : i32
    return %c0_i32, %arg0, %c0_i32_0 : i32, i32, i32
  }
  func.func @transform_2(%arg0: i32) -> (i32, i32, i32) {
    %c0_i32 = arith.constant 0 : i32
    %c0_i32_0 = arith.constant 0 : i32
    %c0_i32_1 = arith.constant 0 : i32
    return %arg0, %c0_i32, %c0_i32_0 : i32, i32, i32
  }
}

</mosaic_0001>

<bundles_post_ra>
// kernel: tpu_custom_call.1
= control target key start
LH: loop header
LB: loop body
LE: loop exit
PB: predicated region body
PF: predicated region fallthrough
CT: control target
= control target key end

     0   :  { %7 = vsyncpa [#allocation3], 0  ;;  %s2403_s0 = inlined_call_operand.hbm [shape: f32[3,8,128], index: 0, kind: input, shape index: {}]   ;;  %s2404_s1 = inlined_call_operand.hbm [shape: f32[3,8,128], index: 1, kind: input, shape index: {}]   ;;  %s2405_s2 = inlined_call_operand.hbm [shape: f32[1,1,128], index: 2, kind: output, shape index: {}]  }
   0x1   :  { %8 = vsyncpa [#allocation6], 0 }
   0x2   :  { %9 = vsyncpa [#allocation4], 0  ;;  %s1627_s9 = smov [#allocation2]   ;;  %s1555_s13 = scalar_lea.hbm %s2403_s0, 384 }
   0x3   :  { %s15_s10 = sshll.u32 %s1627_s9, 4  ;;  %p1556_p0 = scmp.ne.s32.totalorder %s2403_s0, %s1555_s13  ;;  %s16_s10 = int_to_ptr.vmem [resolvable:$true] %s15_s10 }
   0x4   :  { %p1559_p1 = scmp.lt.u32.totalorder %s1555_s13, %s2403_s0 }
   0x6   :  { %p1561_p2 = pnand %p1559_p1, %p1556_p0 }
   0x8   :  { %1564 = shalt.err (!%p1561_p2)
}
   0x9   :  { %s1565_s18 = scalar_lea.vmem %s16_s10, 384  ;;  %p1570_p4 = scmp.lt.s32.totalorder %s16_s10, %s16_s10 }
   0xa   :  { %p1566_p3 = scmp.ne.s32.totalorder %s16_s10, %s1565_s18  ;;  %p1571_p5 = scmp.lt.s32.totalorder %s1565_s18, %s1565_s18 }
   0xc   :  { %p1572_p6 = por %p1571_p5, %p1570_p4 }
   0xe   :  { %p1573_p7 = pnand %p1572_p6, %p1566_p3 }
  0x10   :  { %1576 = shalt.err (!%p1573_p7)
}
  0x11   :  { %s1628_s19 = smov 128   ;;  %s1629_s20 = smov 8  }
  0x12   :  { %21 = dma.hbm_to_vmem [thread:$0]  %s2403_s0, 384, %s16_s10, [#allocation3], %s1628_s19, %s1628_s19, %s1629_s20  }
  0x13   :  { %s1630_s23 = smov [#allocation5]   ;;  %s1577_s27 = scalar_lea.hbm %s2404_s1, 384 }
  0x14   :  { %s27_s24 = sshll.u32 %s1630_s23, 4  ;;  %p1578_p8 = scmp.ne.s32.totalorder %s2404_s1, %s1577_s27  ;;  %s28_s24 = int_to_ptr.vmem [resolvable:$true] %s27_s24 }
  0x15   :  { %p1581_p9 = scmp.lt.u32.totalorder %s1577_s27, %s2404_s1 }
  0x17   :  { %p1583_p10 = pnand %p1581_p9, %p1578_p8 }
  0x19   :  { %1586 = shalt.err (!%p1583_p10)
}
  0x1a   :  { %s1587_s4 = scalar_lea.vmem %s28_s24, 384  ;;  %p1592_p12 = scmp.lt.s32.totalorder %s28_s24, %s28_s24 }
  0x1b   :  { %p1588_p11 = scmp.ne.s32.totalorder %s28_s24, %s1587_s4  ;;  %p1593_p13 = scmp.lt.s32.totalorder %s1587_s4, %s1587_s4 }
  0x1d   :  { %p1594_p0 = por %p1593_p13, %p1592_p12 }
  0x1f   :  { %p1595_p1 = pnand %p1594_p0, %p1588_p11 }
  0x21   :  { %1598 = shalt.err (!%p1595_p1)
}
  0x22   :  { %33 = dma.hbm_to_vmem [thread:$0]  %s2404_s1, 384, %s28_s24, [#allocation6], %s1628_s19, %s1628_s19, %s1629_s20  }
  0x23   :  { %1621 = dma.done.wait [#allocation3], 384  }
  0x24   :  { %1622 = vsyncadd [#allocation3], 4294966912 }
  0x25   :  { %1623 = dma.done.wait [#allocation6], 384  }
  0x26   :  { %1624 = vsyncadd [#allocation6], 4294966912  ;;  %v50_v0 = vld [vmem:[#allocation2] sm:$0xff]  ;;  %v52_v1 = vld [vmem:[#allocation2 + $0x8] sm:$0xff]  ;;  %v2406_v32 = vmov 0.0   ;;  %s1639_s1 = smov [#allocation7]  }
  0x27   :  { %v60_v2 = vadd.f32 0.055, %v50_v0  ;;  %v54_v3 = vld [vmem:[#allocation2 + $0x10] sm:$0xff]  ;;  %v78_v4 = vadd.f32 0.055, %v52_v1  ;;  %v1679_v6 = vld [vmem:[#allocation5] sm:$0xff] }
  0x28   :  { %v94_v8 = vadd.f32 0.055, %v54_v3  ;;  %v1681_v9 = vld [vmem:[#allocation5 + $0x8] sm:$0xff]  ;;  %v198_v11 = vadd.f32 0.055, %v1679_v6  ;;  %v1684_v12 = vld [vmem:[#allocation5 + $0x10] sm:$0xff] }
  0x29   :  { %v62_v5 = vmul.f32 0.94786733, %v60_v2  ;;  %v79_v7 = vmul.f32 0.94786733, %v78_v4  ;;  %v214_v14 = vadd.f32 0.055, %v1681_v9 }
  0x2a   :  { %v95_v10 = vmul.f32 0.94786733, %v94_v8  ;;  %v199_v13 = vmul.f32 0.94786733, %v198_v11  ;;  %v230_v16 = vadd.f32 0.055, %v1684_v12 }
  0x2b   :  { %1447 = vlog2.f32 %v62_v5  ;;  %v215_v15 = vmul.f32 0.94786733, %v214_v14  ;;  %vm70_vm0 = vcmp.gt.f32.partialorder %v50_v0, 0.0405  ;;  %vm86_vm1 = vcmp.gt.f32.partialorder %v52_v1, 0.0405 }
  0x2c   :  { %1449 = vlog2.f32 %v79_v7  ;;  %v231_v17 = vmul.f32 0.94786733, %v230_v16  ;;  %v1346_v33 = vsel %vm70_vm0, 1.0, %v2406_v32  ;;  %v1347_v34 = vsel %vm86_vm1, 1.0, %v2406_v32  ;;  %s1336_s6 = sshll.u32 %s1639_s1, 4  ;;  %s1337_s6 = int_to_ptr.vmem [resolvable:$true] %s1336_s6 }
  0x2d   :  { %1451 = vlog2.f32 %v95_v10  ;;  %vm102_vm2 = vcmp.gt.f32.partialorder %v54_v3, 0.0405  ;;  %v69_v39 = vmul.f32 0.07739938, %v50_v0  ;;  %v85_v40 = vmul.f32 0.07739938, %v52_v1  ;;  %p1604_p3 = scmp.lt.s32.totalorder %s1337_s6, %s1337_s6 }
  0x2e   :  { %1453 = vlog2.f32 %v199_v13  ;;  %v74_v44 = vsub.f32 1.0, %v1346_v33  ;;  %v90_v45 = vsub.f32 1.0, %v1347_v34  ;;  %v1348_v46 = vsel %vm102_vm2, 1.0, %v2406_v32  ;;  %s1599_s7 = scalar_lea.vmem %s1337_s6, 16  ;;  %s1603_s8 = scalar_lea.vmem %s1337_s6, 32 }
  0x2f   :  { %1455 = vlog2.f32 %v215_v15  ;;  %vm206_vm3 = vcmp.gt.f32.partialorder %v1679_v6, 0.0405  ;;  %vm222_vm4 = vcmp.gt.f32.partialorder %v1681_v9, 0.0405  ;;  %v101_v49 = vmul.f32 0.07739938, %v54_v3  ;;  %p1600_p2 = scmp.ne.s32.totalorder %s1337_s6, %s1599_s7  ;;  %p1605_p4 = scmp.lt.s32.totalorder %s1603_s8, %s1599_s7 }
  0x30   :  { %1457 = vlog2.f32 %v231_v17  ;;  %v1356_v50 = vsel %vm206_vm3, 1.0, %v2406_v32  ;;  %v75_v52 = vmul.f32 %v74_v44, %v69_v39  ;;  %v106_v53 = vsub.f32 1.0, %v1348_v46 }
  0x31   :  { %v1357_v54 = vsel %vm222_vm4, 1.0, %v2406_v32  ;;  %vm238_vm5 = vcmp.gt.f32.partialorder %v1684_v12, 0.0405  ;;  %v91_v56 = vmul.f32 %v90_v45, %v85_v40  ;;  %v205_v59 = vmul.f32 0.07739938, %v1679_v6  ;;  %p1606_p5 = por %p1605_p4, %p1604_p3 }
  0x32   :  { %v210_v60 = vsub.f32 1.0, %v1356_v50  ;;  %v221_v62 = vmul.f32 0.07739938, %v1681_v9  ;;  %v226_v63 = vsub.f32 1.0, %v1357_v54  ;;  %v1358_v0 = vsel %vm238_vm5, 1.0, %v2406_v32 }
  0x33   :  { %v107_v2 = vmul.f32 %v106_v53, %v101_v49  ;;  %v237_v8 = vmul.f32 0.07739938, %v1684_v12  ;;  %v242_v10 = vsub.f32 1.0, %v1358_v0  ;;  %p1607_p6 = pnand %p1606_p5, %p1600_p2 }
  0x34   :  { %v211_v14 = vmul.f32 %v210_v60, %v205_v59  ;;  %v227_v6 = vmul.f32 %v226_v63, %v221_v62 }
  0x35   :  { %v1448_v18 = vpop.eup %1447 }
  0x36   :  { %v1450_v19 = vpop.eup %1449  ;;  %v64_v20 = vmul.f32 0.6931472, %v1448_v18 }
  0x37   :  { %v81_v21 = vmul.f32 0.6931472, %v1450_v19  ;;  %v1452_v23 = vpop.eup %1451 }
  0x38   :  { %v65_v22 = vmul.f32 2.4, %v64_v20  ;;  %v97_v26 = vmul.f32 0.6931472, %v1452_v23  ;;  %v1454_v27 = vpop.eup %1453 }
  0x39   :  { %v82_v24 = vmul.f32 2.4, %v81_v21  ;;  %v201_v30 = vmul.f32 0.6931472, %v1454_v27  ;;  %v1456_v31 = vpop.eup %1455 }
  0x3a   :  { %v66_v25 = vmul.f32 1.442695, %v65_v22  ;;  %v98_v29 = vmul.f32 2.4, %v97_v26  ;;  %v217_v37 = vmul.f32 0.6931472, %v1456_v31  ;;  %v1458_v38 = vpop.eup %1457 }
  0x3b   :  { %v83_v28 = vmul.f32 1.442695, %v82_v24  ;;  %v202_v36 = vmul.f32 2.4, %v201_v30  ;;  %v233_v43 = vmul.f32 0.6931472, %v1458_v38 }
  0x3c   :  { %1459 = vpow2.f32 %v66_v25  ;;  %v99_v35 = vmul.f32 1.442695, %v98_v29  ;;  %v218_v42 = vmul.f32 2.4, %v217_v37  ;;  %v243_v25 = vmul.f32 %v242_v10, %v237_v8 }
  0x3d   :  { %1461 = vpow2.f32 %v83_v28  ;;  %v203_v41 = vmul.f32 1.442695, %v202_v36  ;;  %v234_v48 = vmul.f32 2.4, %v233_v43 }
  0x3e   :  { %1463 = vpow2.f32 %v99_v35  ;;  %v219_v47 = vmul.f32 1.442695, %v218_v42 }
  0x3f   :  { %1465 = vpow2.f32 %v203_v41  ;;  %v235_v51 = vmul.f32 1.442695, %v234_v48 }
  0x40   :  { %1467 = vpow2.f32 %v219_v47 }
  0x41   :  { %1469 = vpow2.f32 %v235_v51 }
  0x46   :  { %v1460_v55 = vpop.eup %1459 }
  0x47   :  { %v1462_v57 = vpop.eup %1461  ;;  %v73_v58 = vmul.f32 %v1460_v55, %v1346_v33 }
  0x48   :  { %v89_v61 = vmul.f32 %v1462_v57, %v1347_v34  ;;  %v1464_v3 = vpop.eup %1463 }
  0x49   :  { %v76_v1 = vadd.f32 %v75_v52, %v73_v58  ;;  %v105_v7 = vmul.f32 %v1464_v3, %v1348_v46  ;;  %v1466_v11 = vpop.eup %1465 }
  0x4a   :  { %v92_v4 = vadd.f32 %v91_v56, %v89_v61  ;;  %v1468_v18 = vpop.eup %1467  ;;  %v209_v22 = vmul.f32 %v1466_v11, %v1356_v50 }
  0x4b   :  { %v77_v5 = vmul.f32 100.0, %v76_v1  ;;  %v108_v15 = vadd.f32 %v107_v2, %v105_v7  ;;  %v225_v24 = vmul.f32 %v1468_v18, %v1357_v54  ;;  %v1470_v26 = vpop.eup %1469 }
  0x4c   :  { %v93_v13 = vmul.f32 100.0, %v92_v4  ;;  %v212_v29 = vadd.f32 %v211_v14, %v209_v22  ;;  %v241_v36 = vmul.f32 %v1470_v26, %v1358_v0 }
  0x4d   :  { %v110_v16 = vmul.f32 0.4124, %v77_v5  ;;  %v115_v17 = vmul.f32 0.2126, %v77_v5  ;;  %v120_v9 = vmul.f32 0.0193, %v77_v5  ;;  %v228_v34 = vadd.f32 %v227_v6, %v225_v24 }
  0x4e   :  { %v111_v19 = vmul.f32 0.3576, %v93_v13  ;;  %v116_v20 = vmul.f32 0.7152, %v93_v13  ;;  %v121_v21 = vmul.f32 0.1192, %v93_v13  ;;  %v244_v41 = vadd.f32 %v243_v25, %v241_v36 }
  0x4f   :  { %v109_v23 = vmul.f32 100.0, %v108_v15  ;;  %v213_v35 = vmul.f32 100.0, %v212_v29  ;;  %v229_v40 = vmul.f32 100.0, %v228_v34 }
  0x50   :  { %v112_v27 = vadd.f32 %v111_v19, %v110_v16  ;;  %v117_v12 = vadd.f32 %v116_v20, %v115_v17  ;;  %v122_v28 = vadd.f32 %v121_v21, %v120_v9  ;;  %v245_v45 = vmul.f32 100.0, %v244_v41 }
  0x51   :  { %v113_v30 = vmul.f32 0.1805, %v109_v23  ;;  %v118_v31 = vmul.f32 0.0722, %v109_v23  ;;  %v123_v33 = vmul.f32 0.9504, %v109_v23 }
  0x52   :  { %v246_v46 = vmul.f32 0.4124, %v213_v35  ;;  %v247_v47 = vmul.f32 0.3576, %v229_v40  ;;  %v251_v53 = vmul.f32 0.2126, %v213_v35 }
  0x53   :  { %v114_v37 = vadd.f32 %v113_v30, %v112_v27  ;;  %v119_v38 = vadd.f32 %v118_v31, %v117_v12  ;;  %v124_v39 = vadd.f32 %v123_v33, %v122_v28  ;;  %v252_v54 = vmul.f32 0.7152, %v229_v40 }
  0x54   :  { %v248_v56 = vadd.f32 %v247_v47, %v246_v46  ;;  %v249_v57 = vmul.f32 0.1805, %v245_v45  ;;  %v256_v58 = vmul.f32 0.0193, %v213_v35  ;;  %v257_v59 = vmul.f32 0.1192, %v229_v40 }
  0x55   :  { %v125_v42 = vmul.f32 0.010520901, %v114_v37  ;;  %v148_v43 = vmul.f32 0.01, %v119_v38  ;;  %v170_v44 = vmul.f32 0.009184086, %v124_v39  ;;  %v253_v60 = vadd.f32 %v252_v54, %v251_v53 }
  0x56   :  { %v250_v61 = vadd.f32 %v249_v57, %v248_v56  ;;  %v254_v62 = vmul.f32 0.0722, %v245_v45  ;;  %v258_v63 = vadd.f32 %v257_v59, %v256_v58  ;;  %v259_v0 = vmul.f32 0.9504, %v245_v45 }
  0x57   :  { %vm126_vm6 = vcmp.eq.f32.partialorder %v125_v42, 0.0  ;;  %vm149_vm7 = vcmp.eq.f32.partialorder %v148_v43, 0.0  ;;  %vm171_vm8 = vcmp.eq.f32.partialorder %v170_v44, 0.0 }
  0x58   :  { %v1701_v48 = vsel %vm126_vm6, 1.0, %v2406_v32  ;;  %v1704_v49 = vsel %vm149_vm7, 1.0, %v2406_v32  ;;  %v1707_v50 = vsel %vm171_vm8, 1.0, %v2406_v32  ;;  %v255_v1 = vadd.f32 %v254_v62, %v253_v60 }
  0x59   :  { %v129_v51 = vadd.f32 %v1701_v48, %v125_v42  ;;  %v152_v52 = vadd.f32 %v1704_v49, %v148_v43  ;;  %v174_v55 = vadd.f32 %v1707_v50, %v170_v44  ;;  %v261_v2 = vmul.f32 0.010520901, %v250_v61 }
  0x5a   :  { %v260_v3 = vadd.f32 %v259_v0, %v258_v63  ;;  %v283_v4 = vmul.f32 0.01, %v255_v1  ;;  %v136_v29 = vsub.f32 1.0, %v1701_v48  ;;  %v158_v34 = vsub.f32 1.0, %v1704_v49 }
  0x5b   :  { %1471 = vlog2.f32 %v129_v51  ;;  %vm262_vm9 = vcmp.eq.f32.partialorder %v261_v2, 0.0  ;;  %vm139_vm12 = vcmp.gt.f32.partialorder %v129_v51, 0.008856  ;;  %vm161_vm13 = vcmp.gt.f32.partialorder %v152_v52, 0.008856 }
  0x5c   :  { %1473 = vlog2.f32 %v152_v52  ;;  %v1713_v5 = vsel %vm262_vm9, 1.0, %v2406_v32  ;;  %vm284_vm10 = vcmp.eq.f32.partialorder %v283_v4, 0.0  ;;  %v305_v10 = vmul.f32 0.009184086, %v260_v3 }
  0x5d   :  { %1475 = vlog2.f32 %v174_v55  ;;  %v1716_v8 = vadd.f32 %v1713_v5, %v261_v2  ;;  %v1719_v14 = vsel %vm284_vm10, 1.0, %v2406_v32  ;;  %v143_v26 = vmul.f32 7.787, %v129_v51 }
  0x5e   :  { %v1723_v9 = vadd.f32 %v1719_v14, %v283_v4  ;;  %vm306_vm11 = vcmp.eq.f32.partialorder %v305_v10, 0.0  ;;  %vm183_vm14 = vcmp.gt.f32.partialorder %v174_v55, 0.008856  ;;  %v1350_v27 = vsel %vm139_vm12, 1.0, %v2406_v32 }
  0x5f   :  { %1477 = vlog2.f32 %v1716_v8  ;;  %v1727_v23 = vsel %vm306_vm11, 1.0, %v2406_v32  ;;  %v165_v12 = vmul.f32 7.787, %v152_v52  ;;  %v1352_v30 = vsel %vm161_vm13, 1.0, %v2406_v32 }
  0x60   :  { %1479 = vlog2.f32 %v1723_v9  ;;  %v1730_v24 = vadd.f32 %v1727_v23, %v305_v10  ;;  %v187_v31 = vmul.f32 7.787, %v174_v55  ;;  %v1354_v35 = vsel %vm183_vm14, 1.0, %v2406_v32 }
  0x61   :  { %v144_v37 = vadd.f32 0.137931, %v143_v26  ;;  %v145_v38 = vsub.f32 1.0, %v1350_v27  ;;  %v180_v39 = vsub.f32 1.0, %v1707_v50  ;;  %v166_v42 = vadd.f32 0.137931, %v165_v12 }
  0x62   :  { %v167_v43 = vsub.f32 1.0, %v1352_v30  ;;  %v188_v47 = vadd.f32 0.137931, %v187_v31  ;;  %v189_v51 = vsub.f32 1.0, %v1354_v35  ;;  %vm274_vm15 = vcmp.gt.f32.partialorder %v1716_v8, 0.008856 }
  0x63   :  { %v146_v57 = vmul.f32 %v145_v38, %v144_v37  ;;  %vm296_vm0 = vcmp.gt.f32.partialorder %v1723_v9, 0.008856  ;;  %vm318_vm1 = vcmp.gt.f32.partialorder %v1730_v24, 0.008856 }
  0x64   :  { %v168_v61 = vmul.f32 %v167_v43, %v166_v42  ;;  %v190_v1 = vmul.f32 %v189_v51, %v188_v47  ;;  %v1364_v31 = vsel %vm318_vm1, 1.0, %v2406_v32 }
  0x65   :  { %v1472_v7 = vpop.eup %1471 }
  0x66   :  { %v1474_v11 = vpop.eup %1473  ;;  %v131_v13 = vmul.f32 0.6931472, %v1472_v7 }
  0x67   :  { %v1476_v6 = vpop.eup %1475  ;;  %v154_v15 = vmul.f32 0.6931472, %v1474_v11 }
  0x68   :  { %v133_v16 = vmul.f32 0.33333334, %v131_v13  ;;  %v176_v17 = vmul.f32 0.6931472, %v1476_v6  ;;  %v271_v13 = vsub.f32 1.0, %v1713_v5 }
  0x69   :  { %v155_v18 = vmul.f32 0.33333334, %v154_v15  ;;  %v1478_v25 = vpop.eup %1477  ;;  %v300_v15 = vmul.f32 7.787, %v1723_v9 }
  0x6a   :  { %v134_v19 = vmul.f32 1.442695, %v133_v16  ;;  %v177_v20 = vmul.f32 0.33333334, %v176_v17  ;;  %v267_v28 = vmul.f32 0.6931472, %v1478_v25  ;;  %v1480_v33 = vpop.eup %1479 }
  0x6b   :  { %v156_v21 = vmul.f32 1.442695, %v155_v18  ;;  %v289_v40 = vmul.f32 0.6931472, %v1480_v33  ;;  %v1362_v17 = vsel %vm296_vm0, 1.0, %v2406_v32 }
  0x6c   :  { %1481 = vpow2.f32 %v134_v19  ;;  %v178_v22 = vmul.f32 1.442695, %v177_v20  ;;  %v268_v36 = vmul.f32 0.33333334, %v267_v28  ;;  %v301_v26 = vadd.f32 0.137931, %v300_v15 }
  0x6d   :  { %1483 = vpow2.f32 %v156_v21  ;;  %v290_v52 = vmul.f32 0.33333334, %v289_v40  ;;  %v293_v21 = vsub.f32 1.0, %v1719_v14  ;;  %v322_v28 = vmul.f32 7.787, %v1730_v24 }
  0x6e   :  { %1485 = vpow2.f32 %v178_v22  ;;  %v269_v44 = vmul.f32 1.442695, %v268_v36 }
  0x6f   :  { %1487 = vlog2.f32 %v1730_v24  ;;  %v291_v59 = vmul.f32 1.442695, %v290_v52  ;;  %v323_v38 = vadd.f32 0.137931, %v322_v28 }
  0x70   :  { %1489 = vpow2.f32 %v269_v44 }
  0x71   :  { %1491 = vpow2.f32 %v291_v59 }
  0x76   :  { %v1482_v41 = vpop.eup %1481 }
  0x77   :  { %v1484_v45 = vpop.eup %1483  ;;  %v137_v46 = vmul.f32 %v1482_v41, %v136_v29 }
  0x78   :  { %v1486_v53 = vpop.eup %1485  ;;  %v159_v54 = vmul.f32 %v1484_v45, %v158_v34  ;;  %v315_v34 = vsub.f32 1.0, %v1727_v23 }
  0x79   :  { %v1488_v55 = vpop.eup %1487  ;;  %v138_v56 = vadd.f32 %v1701_v48, %v137_v46  ;;  %v181_v58 = vmul.f32 %v1486_v53, %v180_v39  ;;  %v278_v48 = vmul.f32 7.787, %v1716_v8  ;;  %v324_v39 = vsub.f32 1.0, %v1364_v31 }
  0x7a   :  { %v160_v60 = vadd.f32 %v1704_v49, %v159_v54  ;;  %v311_v62 = vmul.f32 0.6931472, %v1488_v55  ;;  %v1490_v18 = vpop.eup %1489 }
  0x7b   :  { %v142_v63 = vmul.f32 %v1350_v27, %v138_v56  ;;  %v182_v0 = vadd.f32 %v1707_v50, %v181_v58  ;;  %v1360_v50 = vsel %vm274_vm15, 1.0, %v2406_v32  ;;  %v279_v8 = vadd.f32 0.137931, %v278_v48  ;;  %v1492_v9 = vpop.eup %1491 }
  0x7c   :  { %v164_v2 = vmul.f32 %v1352_v30, %v160_v60  ;;  %v312_v3 = vmul.f32 0.33333334, %v311_v62  ;;  %v280_v20 = vsub.f32 1.0, %v1360_v50  ;;  %v272_v25 = vmul.f32 %v1490_v18, %v271_v13 }
  0x7d   :  { %v147_v4 = vadd.f32 %v146_v57, %v142_v63  ;;  %v186_v7 = vmul.f32 %v1354_v35, %v182_v0  ;;  %v302_v27 = vsub.f32 1.0, %v1362_v17  ;;  %v294_v30 = vmul.f32 %v1492_v9, %v293_v21 }
  0x7e   :  { %v1743_v10 = vadd.f32 %v168_v61, %v164_v2  ;;  %v313_v49 = vmul.f32 1.442695, %v312_v3  ;;  %v273_v12 = vadd.f32 %v1713_v5, %v272_v25  ;;  %v281_v29 = vmul.f32 %v280_v20, %v279_v8 }
  0x7f   :  { %v191_v11 = vadd.f32 %v190_v1, %v186_v7  ;;  %v295_v36 = vadd.f32 %v1719_v14, %v294_v30  ;;  %v303_v37 = vmul.f32 %v302_v27, %v301_v26  ;;  %v325_v45 = vmul.f32 %v324_v39, %v323_v38 }
  0x80   :  { %v194_v6 = vsub.f32 %v147_v4, %v1743_v10  ;;  %1493 = vpow2.f32 %v313_v49  ;;  %v277_v33 = vmul.f32 %v1360_v50, %v273_v12 }
  0x81   :  { %v196_v16 = vsub.f32 %v1743_v10, %v191_v11  ;;  %v299_v24 = vmul.f32 %v1362_v17, %v295_v36 }
  0x82   :  { %v1753_v19 = vmul.f32 500.0, %v194_v6  ;;  %v282_v40 = vadd.f32 %v281_v29, %v277_v33  ;;  %v192_v6 = vmul.f32 116.0, %v1743_v10 }
  0x83   :  { %v197_v22 = vmul.f32 200.0, %v196_v16  ;;  %v304_v43 = vadd.f32 %v303_v37, %v299_v24 }
  0x84   :  { %vm338_vm2 = vcmp.eq.f32.partialorder %v1753_v19, 0.0  ;;  %v357_v14 = vmul.f32 %v1753_v19, %v1753_v19  ;;  %v1786_v18 = vadd.f32 -16.0, %v192_v6 }
  0x85   :  { %vm339_vm3 = vcmp.eq.f32.partialorder %v197_v22, 0.0  ;;  %v329_v46 = vsub.f32 %v282_v40, %v304_v43  ;;  %v327_v15 = vmul.f32 116.0, %v304_v43 }
  0x86   :  { %vm340_vm4 = vmand %vm338_vm2, %vm339_vm3 }
  0x87   :  { %v1763_v35 = vsel %vm340_vm4, 1.0, %v2406_v32  ;;  %v330_v53 = vmul.f32 500.0, %v329_v46  ;;  %v1788_v8 = vadd.f32 -16.0, %v327_v15 }
  0x88   :  { %v345_v41 = vmul.f32 0.0001, %v1763_v35 }
  0x89   :  { %vm333_vm5 = vcmp.eq.f32.partialorder %v330_v53, 0.0  ;;  %v347_v60 = vmul.f32 %v330_v53, %v330_v53 }
  0x8a   :  { %v1494_v5 = vpop.eup %1493  ;;  %v1768_v47 = vadd.f32 %v345_v41, %v197_v22 }
  0x8b   :  { %v316_v42 = vmul.f32 %v1494_v5, %v315_v34 }
  0x8c   :  { %v1774_v54 = vmul.f32 %v1768_v47, %v1768_v47  ;;  %vm474_vm15 = vcmp.eq.f32.partialorder %v1768_v47, 0.0 }
  0x8d   :  { %v317_v44 = vadd.f32 %v1727_v23, %v316_v42 }
  0x8e   :  { %v359_v57 = vadd.f32 %v1774_v54, %v357_v14 }
  0x8f   :  { %v321_v51 = vmul.f32 %v1364_v31, %v317_v44 }
  0x90   :  { %1495 = vrsqrt.f32 %v359_v57  ;;  %vm362_vm8 = vcmp.eq.f32.partialorder %v359_v57, inf  ;;  %v365_v1 = vand.u32 2147483648, %v359_v57  ;;  %vm364_vm9 = vcmp.eq.f32.partialorder %v359_v57, 0.0 }
  0x91   :  { %v326_v52 = vadd.f32 %v325_v45, %v321_v51 }
  0x93   :  { %v331_v55 = vsub.f32 %v304_v43, %v326_v52 }
  0x95   :  { %v332_v56 = vmul.f32 200.0, %v331_v55 }
  0x97   :  { %vm334_vm6 = vcmp.eq.f32.partialorder %v332_v56, 0.0 }
  0x98   :  { %vm335_vm7 = vmand %vm333_vm5, %vm334_vm6 }
  0x99   :  { %v1778_v23 = vsel %vm335_vm7, 1.0, %v2406_v32 }
  0x9a   :  { %v343_v58 = vmul.f32 0.0001, %v1778_v23  ;;  %v1496_v63 = vpop.eup %1495 }
  0x9b   :  { %v361_v0 = vmul.f32 %v1496_v63, %v359_v57 }
  0x9c   :  { %v1781_v59 = vadd.f32 %v343_v58, %v332_v56 }
  0x9d   :  { %v363_v2 = vsel %vm362_vm8, %v359_v57, %v361_v0 }
  0x9e   :  { %v348_v61 = vmul.f32 %v1781_v59, %v1781_v59  ;;  %v366_v48 = vsel %vm364_vm9, %v365_v1, %v363_v2  ;;  %vm406_vm14 = vcmp.eq.f32.partialorder %v1781_v59, 0.0 }
  0xa0   :  { %v349_v62 = vadd.f32 %v348_v61, %v347_v60 }
  0xa2   :  { %1497 = vrsqrt.f32 %v349_v62  ;;  %vm352_vm10 = vcmp.eq.f32.partialorder %v349_v62, inf  ;;  %v355_v4 = vand.u32 2147483648, %v349_v62  ;;  %vm354_vm11 = vcmp.eq.f32.partialorder %v349_v62, 0.0 }
  0xac   :  { %v1498_v3 = vpop.eup %1497 }
  0xad   :  { %v351_v7 = vmul.f32 %v1498_v3, %v349_v62 }
  0xaf   :  { %v353_v49 = vsel %vm352_vm10, %v349_v62, %v351_v7 }
  0xb0   :  { %v356_v11 = vsel %vm354_vm11, %v355_v4, %v353_v49 }
  0xb1   :  { %v367_v13 = vadd.f32 %v366_v48, %v356_v11  ;;  %v1792_v25 = vmul.f32 %v366_v48, %v356_v11 }
  0xb3   :  { %v368_v50 = vmul.f32 0.5, %v367_v13 }
  0xb5   :  { %v369_v16 = vmul.f32 %v368_v50, %v368_v50 }
  0xb7   :  { %v370_v17 = vmul.f32 %v369_v16, %v368_v50 }
  0xb9   :  { %v371_v20 = vmul.f32 %v370_v17, %v370_v17 }
  0xbb   :  { %v372_v21 = vmul.f32 %v371_v20, %v368_v50 }
  0xbd   :  { %v373_v26 = vadd.f32 6.1035156e+09, %v372_v21 }
  0xbf   :  { %1499 = vrcp.f32 %v373_v26 }
  0xc9   :  { %v1500_v27 = vpop.eup %1499 }
  0xca   :  { %v375_v9 = vmul.f32 %v1500_v27, %v372_v21 }
  0xcc   :  { %1501 = vrsqrt.f32 %v375_v9  ;;  %vm378_vm12 = vcmp.eq.f32.partialorder %v375_v9, inf  ;;  %v381_v12 = vand.u32 2147483648, %v375_v9  ;;  %vm380_vm13 = vcmp.eq.f32.partialorder %v375_v9, 0.0 }
  0xd6   :  { %v1502_v10 = vpop.eup %1501 }
  0xd7   :  { %v377_v28 = vmul.f32 %v1502_v10, %v375_v9 }
  0xd9   :  { %v379_v29 = vsel %vm378_vm12, %v375_v9, %v377_v28 }
  0xda   :  { %v382_v30 = vsel %vm380_vm13, %v381_v12, %v379_v29 }
  0xdb   :  { %v383_v31 = vsub.f32 1.0, %v382_v30 }
  0xdd   :  { %v384_v33 = vmul.f32 0.5, %v383_v31 }
  0xdf   :  { %v385_v34 = vadd.f32 1.0, %v384_v33 }
  0xe1   :  { %v386_v36 = vmul.f32 %v385_v34, %v330_v53  ;;  %v387_v37 = vmul.f32 %v385_v34, %v1753_v19 }
  0xe3   :  { %v388_v38 = vmul.f32 %v386_v36, %v386_v36  ;;  %v397_v39 = vmul.f32 %v387_v37, %v387_v37  ;;  %vm407_vm0 = vcmp.eq.f32.partialorder %v386_v36, 0.0  ;;  %vm475_vm1 = vcmp.eq.f32.partialorder %v387_v37, 0.0 }
  0xe4   :  { %vm408_vm2 = vmand %vm406_vm14, %vm407_vm0 }
  0xe5   :  { %v389_v5 = vadd.f32 %v388_v38, %v348_v61  ;;  %v398_v40 = vadd.f32 %v397_v39, %v1774_v54  ;;  %v1368_v24 = vsel %vm408_vm2, 1.0, %v2406_v32  ;;  %vm476_vm3 = vmand %vm474_vm15, %vm475_vm1  ;;  %v1842_v38 = vadd.f32 %v1788_v8, %v1786_v18 }
  0xe6   :  { %v411_v41 = vsub.f32 1.0, %v1368_v24  ;;  %v1371_v42 = vsel %vm476_vm3, 1.0, %v2406_v32 }
  0xe7   :  { %1503 = vrsqrt.f32 %v389_v5  ;;  %v479_v44 = vsub.f32 1.0, %v1371_v42  ;;  %vm392_vm4 = vcmp.eq.f32.partialorder %v389_v5, inf  ;;  %v395_v58 = vand.u32 2147483648, %v389_v5 }
  0xe8   :  { %1505 = vrsqrt.f32 %v398_v40  ;;  %v1801_v19 = vmul.f32 %v411_v41, %v1781_v59  ;;  %v1803_v43 = vmul.f32 %v411_v41, %v386_v36  ;;  %vm401_vm5 = vcmp.eq.f32.partialorder %v398_v40, inf }
  0xe9   :  { %v1814_v52 = vmul.f32 %v479_v44, %v1768_v47  ;;  %v1816_v53 = vmul.f32 %v479_v44, %v387_v37  ;;  %v404_v59 = vand.u32 2147483648, %v398_v40  ;;  %vm394_vm6 = vcmp.eq.f32.partialorder %v389_v5, 0.0 }
  0xea   :  { %v1806_v45 = vand.u32 2147483647, %v1803_v43  ;;  %v1809_v46 = vand.u32 2147483647, %v1801_v19  ;;  %vm403_vm7 = vcmp.eq.f32.partialorder %v398_v40, 0.0  ;;  %vm444_vm9 = vcmp.lt.s32.totalorder %v1803_v43, 0 }
  0xeb   :  { %v1819_v14 = vand.u32 2147483647, %v1814_v52  ;;  %v1822_v55 = vand.u32 2147483647, %v1816_v53  ;;  %vm441_vm10 = vcmp.lt.f32.partialorder %v1803_v43, 0.0  ;;  %vm448_vm11 = vcmp.ne.f32.partialorder %v1803_v43, %v1803_v43 }
  0xec   :  { %v417_v51 = vmax.f32 %v1806_v45, %v1809_v46  ;;  %v416_v1 = vmin.f32 %v1806_v45, %v1809_v46  ;;  %vm438_vm8 = vcmp.gt.f32.partialorder %v1809_v46, %v1806_v45  ;;  %vm449_vm12 = vcmp.ne.f32.partialorder %v1801_v19, %v1801_v19 }
  0xed   :  { %v485_v47 = vmax.f32 %v1822_v55, %v1819_v14  ;;  %v484_v49 = vmin.f32 %v1822_v55, %v1819_v14  ;;  %vm454_vm13 = vcmp.eq.s32.totalorder %v1806_v45, inf  ;;  %vm455_vm14 = vcmp.eq.s32.totalorder %v1809_v46, inf  ;;  %vm1860_vm0 = vmor %vm448_vm11, %vm449_vm12 }
  0xee   :  { %1507 = vrcp.f32 %v417_v51  ;;  %vm446_vm15 = vcmp.eq.f32.partialorder %v1801_v19, 0.0  ;;  %vm456_vm1 = vmand %vm454_vm13, %vm455_vm14  ;;  %vm506_vm2 = vcmp.gt.f32.partialorder %v1819_v14, %v1822_v55  ;;  %vm512_vm3 = vcmp.lt.s32.totalorder %v1816_v53, 0 }
  0xef   :  { %1509 = vrcp.f32 %v485_v47 }
  0xf1   :  { %v1504_v54 = vpop.eup %1503 }
  0xf2   :  { %v1506_v56 = vpop.eup %1505  ;;  %v391_v57 = vmul.f32 %v1504_v54, %v389_v5 }
  0xf3   :  { %v400_v60 = vmul.f32 %v1506_v56, %v398_v40 }
  0xf4   :  { %v393_v61 = vsel %vm392_vm4, %v389_v5, %v391_v57  ;;  %vm514_vm4 = vcmp.eq.f32.partialorder %v1814_v52, 0.0 }
  0xf5   :  { %v402_v62 = vsel %vm401_vm5, %v398_v40, %v400_v60  ;;  %v1826_v63 = vsel %vm394_vm6, %v395_v58, %v393_v61  ;;  %vm509_vm5 = vcmp.lt.f32.partialorder %v1816_v53, 0.0  ;;  %vm516_vm6 = vcmp.ne.f32.partialorder %v1816_v53, %v1816_v53 }
  0xf6   :  { %v1828_v0 = vsel %vm403_vm7, %v404_v59, %v402_v62  ;;  %vm517_vm7 = vcmp.ne.f32.partialorder %v1814_v52, %v1814_v52 }
  0xf7   :  { %v1836_v3 = vmul.f32 %v1828_v0, %v1826_v63  ;;  %v1846_v40 = vadd.f32 %v1828_v0, %v1826_v63 }
  0xf8   :  { %v1508_v4 = vpop.eup %1507 }
  0xf9   :  { %v419_v7 = vmul.f32 %v1508_v4, %v416_v1  ;;  %v1510_v13 = vpop.eup %1509  ;;  %v445_v4 = vsel %vm444_vm9, 3.1415927, %v2406_v32  ;;  %vm523_vm9 = vcmp.eq.s32.totalorder %v1819_v14, inf  ;;  %1511 = vrsqrt.f32 %v1836_v3 }
  0xfa   :  { %v487_v6 = vmul.f32 %v1510_v13, %v484_v49  ;;  %v1632_v49 = vmov 0.7853982   ;;  %v459_v13 = vand.u32 2147483648, %v1801_v19 }
  0xfb   :  { %v420_v48 = vmul.f32 %v419_v7, %v419_v7 }
  0xfc   :  { %v488_v16 = vmul.f32 %v487_v6, %v487_v6 }
  0xfd   :  { %v421_v11 = vmul.f32 0.002785687, %v420_v48 }
  0xfe   :  { %v489_v20 = vmul.f32 0.002785687, %v488_v16 }
  0xff   :  { %v422_v50 = vadd.f32 -0.015866, %v421_v11  ;;  %v453_v11 = vsel %vm441_vm10, 2.3561945, %v1632_v49 }
 0x100   :  { %v490_v26 = vadd.f32 -0.015866, %v489_v20 }
 0x101   :  { %v423_v15 = vmul.f32 %v422_v50, %v420_v48 }
 0x102   :  { %v491_v9 = vmul.f32 %v490_v26, %v488_v16  ;;  %v521_v26 = vsel %vm509_vm5, 2.3561945, %v1632_v49 }
 0x103   :  { %v424_v17 = vadd.f32 0.04247222, %v423_v15 }
 0x104   :  { %v492_v12 = vadd.f32 0.04247222, %v491_v9 }
 0x105   :  { %v425_v21 = vmul.f32 %v424_v17, %v420_v48  ;;  %v513_v17 = vsel %vm512_vm3, 3.1415927, %v2406_v32 }
 0x106   :  { %v493_v29 = vmul.f32 %v492_v12, %v488_v16 }
 0x107   :  { %v426_v27 = vadd.f32 -0.074975304, %v425_v21 }
 0x108   :  { %v494_v31 = vadd.f32 -0.074975304, %v493_v29 }
 0x109   :  { %v427_v10 = vmul.f32 %v426_v27, %v420_v48 }
 0x10a   :  { %v495_v34 = vmul.f32 %v494_v31, %v488_v16 }
 0x10b   :  { %v428_v28 = vadd.f32 0.1064488, %v427_v10  ;;  %v527_v10 = vand.u32 2147483648, %v1814_v52 }
 0x10c   :  { %v496_v37 = vadd.f32 0.1064488, %v495_v34 }
 0x10d   :  { %v429_v30 = vmul.f32 %v428_v28, %v420_v48 }
 0x10e   :  { %v497_v5 = vmul.f32 %v496_v37, %v488_v16 }
 0x10f   :  { %v430_v33 = vadd.f32 -0.14207031, %v429_v30 }
 0x110   :  { %v498_v41 = vadd.f32 -0.14207031, %v497_v5 }
 0x111   :  { %v431_v36 = vmul.f32 %v430_v33, %v420_v48 }
 0x112   :  { %v499_v44 = vmul.f32 %v498_v41, %v488_v16 }
 0x113   :  { %v432_v39 = vadd.f32 0.19993454, %v431_v36  ;;  %v472_v36 = vsub.f32 1.0, %v1778_v23 }
 0x114   :  { %v500_v54 = vadd.f32 0.19993454, %v499_v44 }
 0x115   :  { %v433_v24 = vmul.f32 %v432_v39, %v420_v48 }
 0x116   :  { %v501_v57 = vmul.f32 %v500_v54, %v488_v16 }
 0x117   :  { %v434_v42 = vadd.f32 -0.33333147, %v433_v24 }
 0x118   :  { %v502_v59 = vadd.f32 -0.33333147, %v501_v57 }
 0x119   :  { %v435_v51 = vmul.f32 %v434_v42, %v420_v48  ;;  %v540_v42 = vsub.f32 1.0, %v1763_v35 }
 0x11a   :  { %v503_v47 = vmul.f32 %v502_v59, %v488_v16 }
 0x11b   :  { %v436_v56 = vmul.f32 %v435_v51, %v419_v7 }
 0x11c   :  { %v504_v62 = vmul.f32 %v503_v47, %v487_v6 }
 0x11d   :  { %v437_v58 = vadd.f32 %v436_v56, %v419_v7 }
 0x11e   :  { %v505_v48 = vadd.f32 %v504_v62, %v487_v6 }
 0x11f   :  { %v439_v60 = vsub.f32 1.5707964, %v437_v58 }
 0x120   :  { %v507_v46 = vsub.f32 1.5707964, %v505_v48 }
 0x121   :  { %v440_v61 = vsel %vm438_vm8, %v439_v60, %v437_v58  ;;  %vm522_vm8 = vcmp.eq.s32.totalorder %v1822_v55, inf }
 0x122   :  { %v442_v1 = vsub.f32 3.1415927, %v440_v61  ;;  %v508_v6 = vsel %vm506_vm2, %v507_v46, %v505_v48  ;;  %vm524_vm11 = vmand %vm522_vm8, %vm523_vm9 }
 0x123   :  { %v510_v16 = vsub.f32 3.1415927, %v508_v6 }
 0x124   :  { %v443_v43 = vsel %vm441_vm10, %v442_v1, %v440_v61  ;;  %vm518_vm10 = vmor %vm516_vm6, %vm517_vm7 }
 0x125   :  { %v447_v45 = vsel %vm446_vm15, %v445_v4, %v443_v43  ;;  %v511_v21 = vsel %vm509_vm5, %v510_v16, %v508_v6 }
 0x126   :  { %v451_v50 = vsel %vm1860_vm0, nan, %v447_v45  ;;  %v515_v53 = vsel %vm514_vm4, %v513_v17, %v511_v21  ;;  %vm545_vm0 = vcmp.eq.f32.partialorder %v1792_v25, 0.0 }
 0x127   :  { %v457_v19 = vsel %vm456_vm1, %v453_v11, %v451_v50  ;;  %v519_v9 = vsel %vm518_vm10, nan, %v515_v53  ;;  %v1374_v54 = vsel %vm545_vm0, 1.0, %v2406_v32 }
 0x128   :  { %v458_v15 = vand.u32 2147483647, %v457_v19  ;;  %v525_v12 = vsel %vm524_vm11, %v521_v26, %v519_v9  ;;  %v548_v57 = vsub.f32 1.0, %v1374_v54 }
 0x129   :  { %v526_v14 = vand.u32 2147483647, %v525_v12 }
 0x12a   :  { %v460_v20 = vor.u32 %v459_v13, %v458_v15 }
 0x12b   :  { %v528_v33 = vor.u32 %v527_v10, %v526_v14 }
 0x12c   :  { %v461_v27 = vmul.f32 57.29578, %v460_v20 }
 0x12d   :  { %v529_v34 = vmul.f32 57.29578, %v528_v33 }
 0x12e   :  { %vm462_vm12 = vcmp.ge.f32.partialorder %v461_v27, 0.0  ;;  %v466_v55 = vadd.f32 360.0, %v461_v27  ;;  %vm467_vm13 = vcmp.lt.f32.partialorder %v461_v27, 0.0 }
 0x12f   :  { %v1369_v28 = vsel %vm462_vm12, 1.0, %v2406_v32  ;;  %v1370_v29 = vsel %vm467_vm13, 1.0, %v2406_v32  ;;  %vm530_vm14 = vcmp.ge.f32.partialorder %v529_v34, 0.0  ;;  %v534_v39 = vadd.f32 360.0, %v529_v34 }
 0x130   :  { %v465_v30 = vmul.f32 %v1369_v28, %v461_v27  ;;  %v470_v31 = vmul.f32 %v1370_v29, %v466_v55  ;;  %vm535_vm15 = vcmp.lt.f32.partialorder %v529_v34, 0.0  ;;  %v1372_v52 = vsel %vm530_vm14, 1.0, %v2406_v32 }
 0x131   :  { %v1373_v5 = vsel %vm535_vm15, 1.0, %v2406_v32  ;;  %v533_v24 = vmul.f32 %v1372_v52, %v529_v34 }
 0x132   :  { %v471_v37 = vadd.f32 %v470_v31, %v465_v30  ;;  %v538_v41 = vmul.f32 %v1373_v5, %v534_v39 }
 0x134   :  { %v473_v44 = vmul.f32 %v472_v36, %v471_v37  ;;  %v539_v51 = vadd.f32 %v538_v41, %v533_v24 }
 0x136   :  { %v541_v56 = vmul.f32 %v540_v42, %v539_v51  ;;  %v1633_v51 = vmov 683565275  }
 0x138   :  { %v549_v58 = vsub.f32 %v541_v56, %v473_v44  ;;  %v693_v59 = vadd.f32 %v541_v56, %v473_v44 }
 0x13a   :  { %v550_v60 = vmul.f32 %v549_v58, %v548_v57  ;;  %v551_v47 = vand.u32 2147483647, %v549_v58  ;;  %v1376_v61 = vadd.f32 -360.0, %v549_v58  ;;  %vm557_vm1 = vcmp.gt.f32.partialorder %v549_v58, 180.0 }
 0x13b   :  { %v1377_v62 = vsel %vm557_vm1, 1.0, %v2406_v32  ;;  %v562_v1 = vadd.f32 360.0, %v549_v58  ;;  %vm563_vm2 = vcmp.lt.f32.partialorder %v549_v58, -180.0  ;;  %v694_v4 = vand.u32 2147483647, %v693_v59 }
 0x13c   :  { %vm552_vm3 = vcmp.le.f32.partialorder %v551_v47, 180.0  ;;  %v560_v7 = vmul.f32 %v1377_v62, %v1376_v61  ;;  %v1378_v25 = vsel %vm563_vm2, 1.0, %v2406_v32  ;;  %v699_v48 = vmul.f32 %v693_v59, %v548_v57 }
 0x13d   :  { %v1375_v43 = vsel %vm552_vm3, 1.0, %v2406_v32  ;;  %v566_v49 = vmul.f32 %v1378_v25, %v562_v1  ;;  %vm695_vm4 = vcmp.lt.f32.partialorder %v694_v4, 360.0  ;;  %v701_v11 = vadd.f32 360.0, %v693_v59 }
 0x13e   :  { %v555_v13 = vmul.f32 %v1375_v43, %v550_v60  ;;  %v561_v45 = vmul.f32 %v560_v7, %v548_v57  ;;  %v692_v46 = vsub.f32 1.0, %v1375_v43  ;;  %v1383_v15 = vsel %vm695_vm4, 1.0, %v2406_v32 }
 0x13f   :  { %v567_v50 = vmul.f32 %v566_v49, %v548_v57  ;;  %v702_v19 = vmul.f32 %v701_v11, %v548_v57  ;;  %v1384_v16 = vadd.f32 -360.0, %v693_v59  ;;  %v700_v17 = vmul.f32 %v1375_v43, %v699_v48 }
 0x140   :  { %v568_v6 = vadd.f32 %v561_v45, %v555_v13  ;;  %v698_v53 = vsub.f32 1.0, %v1383_v15  ;;  %v1635_v58 = vmov 2131351028   ;;  %v1636_v60 = vmov 2102212464  }
 0x141   :  { %v703_v20 = vmul.f32 %v702_v19, %v692_v46  ;;  %v707_v26 = vmul.f32 %v1384_v16, %v548_v57  ;;  %v1634_v57 = vmov 2475754826   ;;  %v1637_v61 = vmov 920167782  }
 0x142   :  { %v569_v21 = vadd.f32 %v568_v6, %v567_v50  ;;  %v1638_v11 = vmov 1326507024  }
 0x143   :  { %v704_v27 = vmul.f32 %v1383_v15, %v703_v20  ;;  %v708_v10 = vmul.f32 %v707_v26, %v692_v46 }
 0x144   :  { %v1894_v9 = vmul.f32 0.008726646, %v569_v21 }
 0x145   :  { %v705_v12 = vadd.f32 %v704_v27, %v700_v17  ;;  %v709_v28 = vmul.f32 %v708_v10, %v698_v53 }
 0x146   :  { %v580_v55 = vand.u32 2147483647, %v1894_v9  ;;  %v583_v14 = vand.u32 2139095040, %v1894_v9  ;;  %vm582_vm1 = vcmp.lt.s32.totalorder %v1894_v9, 0 }
 0x147   :  { %v710_v31 = vadd.f32 %v709_v28, %v705_v12 }
 0x148   :  { %v584_v29 = vshrl.u32 %v583_v14, 23  ;;  %v587_v30 = vand.u32 8388607, %v580_v55  ;;  %vm2007_vm4 = vcmp.le.f32.partialorder %v580_v55, 0.7853982 }
 0x149   :  { %v711_v34 = vmul.f32 %v1374_v54, %v710_v31 }
 0x14a   :  { %v1379_v33 = vadd.s32 4294967169, %v584_v29  ;;  %v588_v37 = vor.u32 8388608, %v587_v30  ;;  %v1512_v30 = vpop.eup %1511 }
 0x14b   :  { %v712_v39 = vadd.f32 %v711_v34, %v710_v31 }
 0x14c   :  { %v590_v36 = vadd.s32 1, %v1379_v33  ;;  %v1903_v42 = vshll.u32 %v588_v37, 8 }
 0x14d   :  { %v1900_v5 = vmul.f32 0.5, %v712_v39 }
 0x14e   :  { %vm591_vm5 = vcmp.gt.s32.totalorder %v590_v36, 0 }
 0x14f   :  { %v592_v52 = vsel %vm591_vm5, %v590_v36, 0  ;;  %v1385_v1 = vadd.f32 -39.0, %v1900_v5  ;;  %v821_v4 = vmul.f32 2.0, %v1900_v5  ;;  %v928_v45 = vmul.f32 3.0, %v1900_v5 }
 0x150   :  { %v594_v24 = vand.u32 31, %v592_v52  ;;  %v593_v41 = vshrl.u32 %v592_v52, 5  ;;  %vm573_vm5 = vcmp.eq.f32.partialorder %v1836_v3, inf }
 0x151   :  { %v1919_v10 = vmul.f32 0.017453292, %v1385_v1  ;;  %v1921_v28 = vmul.f32 0.017453292, %v821_v4  ;;  %v929_v29 = vadd.f32 6.0, %v928_v45 }
 0x152   :  { %v595_v44 = vsub.s32 32, %v594_v24  ;;  %v597_v56 = vshll.u32 %v1633_v51, %v594_v24  ;;  %v600_v54 = vshll.u32 %v1634_v57, %v594_v24  ;;  %v603_v59 = vshll.u32 %v1635_v58, %v594_v24 }
 0x153   :  { %v606_v47 = vshll.u32 %v1636_v60, %v594_v24  ;;  %v609_v62 = vshll.u32 %v1637_v61, %v594_v24  ;;  %vm612_vm6 = vcmp.lt.s32.totalorder %v593_v41, 1  ;;  %vm615_vm7 = vcmp.lt.s32.totalorder %v593_v41, 4 }
 0x154   :  { %v596_v7 = vshrl.u32 %v1633_v51, %v595_v44  ;;  %v598_v25 = vshrl.u32 %v1634_v57, %v595_v44  ;;  %v601_v48 = vshrl.u32 %v1635_v58, %v595_v44  ;;  %v604_v43 = vshrl.u32 %v1636_v60, %v595_v44 }
 0x155   :  { %v607_v49 = vshrl.u32 %v1637_v61, %v595_v44  ;;  %v610_v13 = vshrl.u32 %v1638_v11, %v595_v44  ;;  %vm613_vm8 = vcmp.lt.s32.totalorder %v593_v41, 2  ;;  %vm614_vm9 = vcmp.lt.s32.totalorder %v593_v41, 3 }
 0x156   :  { %v599_v46 = vor.u32 %v598_v25, %v597_v56  ;;  %v602_v50 = vor.u32 %v601_v48, %v600_v54  ;;  %v605_v19 = vor.u32 %v604_v43, %v603_v59  ;;  %v716_v36 = vand.u32 2147483647, %v1919_v10 }
 0x157   :  { %v608_v6 = vor.u32 %v607_v49, %v606_v47  ;;  %v611_v15 = vor.u32 %v610_v13, %v609_v62  ;;  %v719_v44 = vand.u32 2139095040, %v1919_v10  ;;  %v826_v56 = vand.u32 2139095040, %v1921_v28 }
 0x158   :  { %v616_v16 = vsel %vm612_vm6, %v596_v7, %v599_v46  ;;  %v617_v17 = vsel %vm615_vm7, %v605_v19, 2102212464  ;;  %v620_v20 = vsel %vm612_vm6, %v599_v46, %v602_v50  ;;  %v624_v21 = vsel %vm612_vm6, %v602_v50, %v605_v19 }
 0x159   :  { %v618_v26 = vsel %vm614_vm9, %v602_v50, %v617_v17  ;;  %v621_v53 = vsel %vm615_vm7, %v608_v6, 920167782  ;;  %v625_v27 = vsel %vm615_vm7, %v611_v15, 1326507024  ;;  %v720_v59 = vshrl.u32 %v719_v44, 23 }
 0x15a   :  { %v622_v12 = vsel %vm614_vm9, %v605_v19, %v621_v53  ;;  %v626_v14 = vsel %vm614_vm9, %v608_v6, %v625_v27  ;;  %v619_v31 = vsel %vm613_vm8, %v616_v16, %v618_v26  ;;  %v723_v41 = vand.u32 8388607, %v716_v36 }
 0x15b   :  { %v623_v33 = vsel %vm613_vm8, %v620_v20, %v622_v12  ;;  %v627_v34 = vsel %vm613_vm8, %v624_v21, %v626_v14  ;;  %v635_v54 = vmul.u32 %v1903_v42, %v619_v31  ;;  %v1940_v47 = vmul.f32 0.017453292, %v929_v29 }
 0x15c   :  { %v1928_v37 = vmul.u32.u64.low %v1903_v42, %v627_v34  ;;  %v1929_v39 = vmul.u32.u64.high %v1903_v42, %v627_v34, %v1928_v37  ;;  %v1932_v52 = vmul.u32.u64.low %v1903_v42, %v623_v33  ;;  %v1933_v24 = vmul.u32.u64.high %v1903_v42, %v623_v33, %v1932_v52 }
 0x15d   :  { %v823_v1 = vand.u32 2147483647, %v1921_v28  ;;  %v827_v4 = vshrl.u32 %v826_v56, 23  ;;  %v1386_v7 = vadd.s32 4294967169, %v720_v59  ;;  %v934_v42 = vand.u32 2139095040, %v1940_v47 }
 0x15e   :  { %vm637_vm10 = vc.u32 %v1929_v39, %v1932_v52  ;;  %v638_v62 = vadd.s32 1, %v1933_v24  ;;  %v724_v13 = vor.u32 8388608, %v723_v41  ;;  %v576_v19 = vand.u32 2147483648, %v1836_v3 }
 0x15f   :  { %v1390_v48 = vadd.s32 4294967169, %v827_v4  ;;  %v726_v49 = vadd.s32 1, %v1386_v7  ;;  %v830_v45 = vand.u32 8388607, %v823_v1  ;;  %v1951_v15 = vmul.f32 %v1512_v30, %v1836_v3 }
 0x160   :  { %v639_v25 = vsel %vm637_vm10, %v638_v62, %v1933_v24  ;;  %v935_v20 = vshrl.u32 %v934_v42, 23  ;;  %v1956_v21 = vadd.s32 %v1932_v52, %v1929_v39  ;;  %v1958_v26 = vshll.u32 %v724_v13, 8 }
 0x161   :  { %v640_v43 = vadd.s32 %v639_v25, %v635_v54  ;;  %vm727_vm11 = vcmp.gt.s32.totalorder %v726_v49, 0  ;;  %v833_v50 = vadd.s32 1, %v1390_v48  ;;  %v831_v53 = vor.u32 8388608, %v830_v45 }
 0x162   :  { %v728_v6 = vsel %vm727_vm11, %v726_v49, 0  ;;  %v931_v27 = vand.u32 2147483647, %v1940_v47  ;;  %v1394_v24 = vadd.s32 4294967169, %v935_v20  ;;  %vm575_vm8 = vcmp.eq.f32.partialorder %v1836_v3, 0.0 }
 0x163   :  { %v641_v46 = vadd.s32 536870912, %v640_v43  ;;  %v730_v17 = vand.u32 31, %v728_v6  ;;  %vm834_vm12 = vcmp.gt.s32.totalorder %v833_v50, 0  ;;  %v729_v30 = vshrl.u32 %v728_v6, 5 }
 0x164   :  { %v835_v59 = vsel %vm834_vm12, %v833_v50, 0  ;;  %v1979_v45 = vshll.u32 %v831_v53, 8  ;;  %v1981_v50 = vadd.s32 1, %v1394_v24 }
 0x165   :  { %v1953_v16 = vshrl.u32 %v641_v46, 30  ;;  %v731_v14 = vsub.s32 32, %v730_v17  ;;  %v733_v29 = vshll.u32 %v1633_v51, %v730_v17  ;;  %v736_v31 = vshll.u32 %v1634_v57, %v730_v17 }
 0x166   :  { %v739_v33 = vshll.u32 %v1635_v58, %v730_v17  ;;  %v742_v34 = vshll.u32 %v1636_v60, %v730_v17  ;;  %v745_v52 = vshll.u32 %v1637_v61, %v730_v17  ;;  %vm748_vm13 = vcmp.lt.s32.totalorder %v729_v30, 1 }
 0x167   :  { %v643_v12 = vshll.u32 %v1953_v16, 30  ;;  %v734_v39 = vshrl.u32 %v1634_v57, %v731_v14  ;;  %v737_v44 = vshrl.u32 %v1635_v58, %v731_v14  ;;  %v740_v56 = vshrl.u32 %v1636_v60, %v731_v14 }
 0x168   :  { %v743_v54 = vshrl.u32 %v1637_v61, %v731_v14  ;;  %v732_v62 = vshrl.u32 %v1633_v51, %v731_v14  ;;  %v746_v7 = vshrl.u32 %v1638_v11, %v731_v14  ;;  %v1977_v13 = vshrl.u32 %v835_v59, 5 }
 0x169   :  { %v1966_v37 = vsub.s32 %v640_v43, %v643_v12  ;;  %v735_v4 = vor.u32 %v734_v39, %v733_v29  ;;  %v738_v25 = vor.u32 %v737_v44, %v736_v31  ;;  %v741_v48 = vor.u32 %v740_v56, %v739_v33 }
 0x16a   :  { %v744_v43 = vor.u32 %v743_v54, %v742_v34  ;;  %v747_v42 = vor.u32 %v746_v7, %v745_v52  ;;  %vm750_vm14 = vcmp.lt.s32.totalorder %v729_v30, 3  ;;  %vm751_vm15 = vcmp.lt.s32.totalorder %v729_v30, 4 }
 0x16b   :  { %v646_v41 = vsub.s32 0, %v1966_v37  ;;  %v837_v46 = vand.u32 31, %v835_v59  ;;  %vm749_vm0 = vcmp.lt.s32.totalorder %v729_v30, 2  ;;  %v752_v17 = vsel %vm748_vm13, %v732_v62, %v735_v4 }
 0x16c   :  { %v756_v20 = vsel %vm748_vm13, %v735_v4, %v738_v25  ;;  %v753_v12 = vsel %vm751_vm15, %v741_v48, 2102212464  ;;  %v757_v14 = vsel %vm751_vm15, %v744_v43, 920167782  ;;  %v760_v29 = vsel %vm748_vm13, %v738_v25, %v741_v48 }
 0x16d   :  { %v1380_v49 = vmin.u32 %v646_v41, %v1966_v37  ;;  %v761_v31 = vsel %vm751_vm15, %v747_v42, 1326507024  ;;  %v754_v34 = vsel %vm750_vm14, %v738_v25, %v753_v12  ;;  %v758_v39 = vsel %vm750_vm14, %v741_v48, %v757_v14 }
 0x16e   :  { %v762_v52 = vsel %vm750_vm14, %v744_v43, %v761_v31  ;;  %v755_v44 = vsel %vm749_vm0, %v752_v17, %v754_v34  ;;  %v759_v53 = vsel %vm749_vm0, %v756_v20, %v758_v39  ;;  %v838_v54 = vsub.s32 32, %v837_v46 }
 0x16f   :  { %v648_v6 = vclz %v1380_v49  ;;  %v763_v56 = vsel %vm749_vm0, %v760_v29, %v762_v52  ;;  %v666_v24 = vsub.s32 4, %v1953_v16  ;;  %v771_v7 = vmul.u32 %v1958_v26, %v755_v44 }
 0x170   :  { %v1986_v30 = vmul.u32.u64.low %v1958_v26, %v763_v56  ;;  %v1987_v59 = vmul.u32.u64.high %v1958_v26, %v763_v56, %v1986_v30  ;;  %v1990_v62 = vmul.u32.u64.low %v1958_v26, %v759_v53  ;;  %v1991_v4 = vmul.u32.u64.high %v1958_v26, %v759_v53, %v1990_v62 }
 0x171   :  { %v1381_v33 = vadd.s32 4294967294, %v648_v6  ;;  %v840_v49 = vshll.u32 %v1633_v51, %v837_v46  ;;  %v841_v42 = vshrl.u32 %v1634_v57, %v838_v54  ;;  %v843_v6 = vshll.u32 %v1634_v57, %v837_v46 }
 0x172   :  { %v844_v17 = vshrl.u32 %v1635_v58, %v838_v54  ;;  %v846_v20 = vshll.u32 %v1635_v58, %v837_v46  ;;  %vm773_vm3 = vc.u32 %v1987_v59, %v1990_v62  ;;  %v839_v26 = vshrl.u32 %v1633_v51, %v838_v54 }
 0x173   :  { %vm1382_vm2 = vcmp.lt.s32.totalorder %v1381_v33, 0  ;;  %v774_v29 = vadd.s32 1, %v1991_v4  ;;  %v842_v31 = vor.u32 %v841_v42, %v840_v49  ;;  %v847_v34 = vshrl.u32 %v1636_v60, %v838_v54 }
 0x174   :  { %v651_v41 = vsel %vm1382_vm2, 0, %v1381_v33  ;;  %v845_v33 = vor.u32 %v844_v17, %v843_v6  ;;  %v849_v52 = vshll.u32 %v1636_v60, %v837_v46  ;;  %v850_v44 = vshrl.u32 %v1637_v61, %v838_v54 }
 0x175   :  { %v652_v25 = vsub.s32 32, %v651_v41  ;;  %v653_v48 = vshll.u32 %v1966_v37, %v651_v41  ;;  %v656_v43 = vsub.s32 4294967266, %v651_v41  ;;  %v775_v53 = vsel %vm773_vm3, %v774_v29, %v1991_v4 }
 0x176   :  { %v848_v55 = vor.u32 %v847_v34, %v846_v20  ;;  %v852_v56 = vshll.u32 %v1637_v61, %v837_v46  ;;  %v853_v30 = vshrl.u32 %v1638_v11, %v838_v54  ;;  %v851_v49 = vor.u32 %v850_v44, %v849_v52 }
 0x177   :  { %v654_v12 = vshrl.u32 %v1956_v21, %v652_v25  ;;  %v657_v14 = vadd.s32 127, %v656_v43  ;;  %v776_v43 = vadd.s32 %v775_v53, %v771_v7  ;;  %vm855_vm6 = vcmp.lt.s32.totalorder %v1977_v13, 1 }
 0x178   :  { %v854_v42 = vor.u32 %v853_v30, %v852_v56  ;;  %vm857_vm7 = vcmp.lt.s32.totalorder %v1977_v13, 3  ;;  %vm856_vm9 = vcmp.lt.s32.totalorder %v1977_v13, 2  ;;  %vm858_vm10 = vcmp.lt.s32.totalorder %v1977_v13, 4 }
 0x179   :  { %v655_v39 = vor.u32 %v654_v12, %v653_v48  ;;  %v658_v21 = vshll.u32 %v657_v14, 23  ;;  %v667_v48 = vsel %vm582_vm1, %v666_v24, %v1953_v16  ;;  %v777_v6 = vadd.s32 536870912, %v776_v43 }
 0x17a   :  { %v859_v46 = vsel %vm855_vm6, %v839_v26, %v842_v31  ;;  %v860_v54 = vsel %vm858_vm10, %v848_v55, 2102212464  ;;  %v863_v7 = vsel %vm855_vm6, %v842_v31, %v845_v33  ;;  %v864_v17 = vsel %vm858_vm10, %v851_v49, 920167782 }
 0x17b   :  { %v659_v41 = vor.u32 4788187, %v658_v21  ;;  %v662_v25 = vcvt.s32.f32 %v655_v39  ;;  %v2027_v12 = vshrl.u32 %v777_v6, 30  ;;  %v865_v16 = vsel %vm857_vm7, %v848_v55, %v864_v17 }
 0x17c   :  { %v867_v24 = vsel %vm855_vm6, %v845_v33, %v848_v55  ;;  %v861_v14 = vsel %vm857_vm7, %v845_v33, %v860_v54  ;;  %v866_v29 = vsel %vm856_vm9, %v863_v7, %v865_v16  ;;  %v868_v34 = vsel %vm858_vm10, %v854_v42, 1326507024 }
 0x17d   :  { %v660_v4 = vand.u32 2147483647, %v659_v41  ;;  %vm942_vm11 = vcmp.gt.s32.totalorder %v1981_v50, 0  ;;  %v669_v31 = vsel %vm2007_vm4, 0, %v667_v48  ;;  %v779_v39 = vshll.u32 %v2027_v12, 30 }
 0x17e   :  { %v869_v21 = vsel %vm857_vm7, %v851_v49, %v868_v34  ;;  %v2044_v33 = vmul.u32.u64.low %v1979_v45, %v866_v29  ;;  %v2045_v44 = vmul.u32.u64.high %v1979_v45, %v866_v29, %v2044_v33  ;;  %v938_v53 = vand.u32 8388607, %v931_v27 }
 0x17f   :  { %v663_v20 = vmul.f32 %v662_v25, %v660_v4  ;;  %v870_v52 = vsel %vm856_vm9, %v867_v24, %v869_v21  ;;  %v2052_v56 = vsub.s32 %v776_v43, %v779_v39  ;;  %v862_v30 = vsel %vm856_vm9, %v859_v46, %v861_v14 }
 0x180   :  { %v943_v41 = vsel %vm942_vm11, %v1981_v50, 0  ;;  %v673_v49 = vadd.s32 3, %v669_v31  ;;  %v2061_v48 = vmul.u32.u64.low %v1979_v45, %v870_v52  ;;  %v2062_v42 = vmul.u32.u64.high %v1979_v45, %v870_v52, %v2061_v48 }
 0x181   :  { %v664_v26 = vxor.u32 2147483648, %v663_v20  ;;  %v574_v43 = vsel %vm573_vm5, %v1836_v3, %v1951_v15  ;;  %v782_v13 = vsub.s32 0, %v2052_v56  ;;  %v1036_v4 = vmul.f32 4.0, %v1900_v5 }
 0x182   :  { %v878_v50 = vmul.u32 %v1979_v45, %v862_v30  ;;  %v881_v37 = vadd.s32 1, %v2045_v44  ;;  %v945_v6 = vand.u32 31, %v943_v41  ;;  %v939_v54 = vor.u32 8388608, %v938_v53 }
 0x183   :  { %v665_v55 = vsel %vm582_vm1, %v664_v26, %v663_v20  ;;  %v1387_v46 = vmin.u32 %v782_v13, %v2052_v56  ;;  %v577_v7 = vsel %vm575_vm8, %v576_v19, %v574_v43  ;;  %v674_v15 = vand.u32 3, %v673_v49 }
 0x184   :  { %v668_v25 = vsel %vm2007_vm4, %v1894_v9, %v665_v55  ;;  %vm880_vm12 = vc.u32 %v2062_v42, %v2044_v33  ;;  %v1398_v16 = vadd.f32 -63.0, %v1036_v4  ;;  %v946_v24 = vsub.s32 32, %v945_v6 }
 0x185   :  { %1513 = vcosq.f32 %v668_v25  ;;  %v784_v17 = vclz %v1387_v46  ;;  %v882_v20 = vsel %vm880_vm12, %v881_v37, %v2045_v44  ;;  %v578_v14 = vmul.f32 2.0, %v577_v7 }
 0x186   :  { %1515 = vsinq.f32 %v668_v25  ;;  %v883_v45 = vadd.s32 %v882_v20, %v878_v50  ;;  %vm672_vm13 = vweird.f32 %v1894_v9  ;;  %v2081_v34 = vshll.u32 %v939_v54, 8 }
 0x187   :  { %v1388_v29 = vadd.s32 4294967294, %v784_v17  ;;  %vm675_vm14 = vcmp.lt.s32.totalorder %v674_v15, 2  ;;  %vm676_vm15 = vcmp.eq.s32.totalorder %v674_v15, 0  ;;  %vm679_vm0 = vcmp.eq.s32.totalorder %v674_v15, 2 }
 0x188   :  { %v884_v3 = vadd.s32 536870912, %v883_v45  ;;  %v772_v19 = vadd.s32 %v1990_v62, %v1987_v59  ;;  %v944_v26 = vshrl.u32 %v943_v41, 5  ;;  %v2085_v31 = vmul.f32 0.017453292, %v1398_v16 }
 0x189   :  { %vm1389_vm1 = vcmp.lt.s32.totalorder %v1388_v29, 0  ;;  %v948_v52 = vshll.u32 %v1633_v51, %v945_v6  ;;  %v949_v44 = vshrl.u32 %v1634_v57, %v946_v24  ;;  %v951_v55 = vshll.u32 %v1634_v57, %v945_v6 }
 0x18a   :  { %v787_v39 = vsel %vm1389_vm1, 0, %v1388_v29  ;;  %v2087_v21 = vshrl.u32 %v884_v3, 30  ;;  %v952_v30 = vshrl.u32 %v1635_v58, %v946_v24  ;;  %v954_v25 = vshll.u32 %v1635_v58, %v945_v6 }
 0x18b   :  { %v955_v59 = vshrl.u32 %v1636_v60, %v946_v24  ;;  %v957_v48 = vshll.u32 %v1636_v60, %v945_v6  ;;  %v958_v43 = vshrl.u32 %v1637_v61, %v946_v24  ;;  %v792_v4 = vsub.s32 4294967266, %v787_v39 }
 0x18c   :  { %v886_v49 = vshll.u32 %v2087_v21, 30  ;;  %v960_v50 = vshll.u32 %v1637_v61, %v945_v6  ;;  %v961_v37 = vshrl.u32 %v1638_v11, %v946_v24  ;;  %v947_v7 = vshrl.u32 %v1633_v51, %v946_v24 }
 0x18d   :  { %v950_v17 = vor.u32 %v949_v44, %v948_v52  ;;  %v788_v16 = vsub.s32 32, %v787_v39  ;;  %v953_v29 = vor.u32 %v952_v30, %v951_v55  ;;  %v956_v3 = vor.u32 %v955_v59, %v954_v25 }
 0x18e   :  { %v2101_v54 = vsub.s32 %v883_v45, %v886_v49  ;;  %v959_v2 = vor.u32 %v958_v43, %v957_v48  ;;  %vm963_vm2 = vcmp.lt.s32.totalorder %v944_v26, 1  ;;  %v962_v45 = vor.u32 %v961_v37, %v960_v50 }
 0x18f   :  { %v1514_v53 = vpop.eup %1513  ;;  %vm966_vm3 = vcmp.lt.s32.totalorder %v944_v26, 4  ;;  %vm965_vm4 = vcmp.lt.s32.totalorder %v944_v26, 3  ;;  %v789_v15 = vshll.u32 %v2052_v56, %v787_v39  ;;  %v790_v44 = vshrl.u32 %v772_v19, %v788_v16 }
 0x190   :  { %v1516_v62 = vpop.eup %1515  ;;  %v680_v41 = vxor.u32 2147483648, %v1514_v53  ;;  %v889_v22 = vsub.s32 0, %v2101_v54  ;;  %v968_v52 = vsel %vm966_vm3, %v956_v3, 2102212464  ;;  %vm964_vm5 = vcmp.lt.s32.totalorder %v944_v26, 2 }
 0x191   :  { %v677_v13 = vxor.u32 2147483648, %v1516_v62  ;;  %v967_v9 = vsel %vm963_vm2, %v947_v7, %v950_v17  ;;  %v975_v30 = vsel %vm963_vm2, %v953_v29, %v956_v3  ;;  %v969_v25 = vsel %vm965_vm4, %v953_v29, %v968_v52 }
 0x192   :  { %v681_v46 = vsel %vm679_vm0, %v680_v41, %v1516_v62  ;;  %v793_v62 = vadd.s32 127, %v792_v4  ;;  %v1391_v24 = vmin.u32 %v889_v22, %v2101_v54  ;;  %v976_v59 = vsel %vm966_vm3, %v962_v45, 1326507024 }
 0x193   :  { %v678_v20 = vsel %vm676_vm15, %v1514_v53, %v677_v13  ;;  %v971_v53 = vsel %vm963_vm2, %v950_v17, %v953_v29  ;;  %v977_v19 = vsel %vm965_vm4, %v959_v2, %v976_v59  ;;  %v970_v13 = vsel %vm964_vm5, %v967_v9, %v969_v25 }
 0x194   :  { %v682_v32 = vsel %vm675_vm14, %v678_v20, %v681_v46  ;;  %v891_v55 = vclz %v1391_v24  ;;  %v978_v39 = vsel %vm964_vm5, %v975_v30, %v977_v19  ;;  %v791_v37 = vor.u32 %v790_v44, %v789_v15 }
 0x195   :  { %v683_v6 = vsel %vm672_vm13, nan, %v682_v32  ;;  %v972_v32 = vsel %vm966_vm3, %v959_v2, 920167782  ;;  %v2130_v4 = vmul.u32.u64.low %v2081_v34, %v978_v39  ;;  %v2131_v50 = vmul.u32.u64.high %v2081_v34, %v978_v39, %v2130_v4 }
 0x196   :  { %v2109_v41 = vmul.f32 %v683_v6, %v578_v14  ;;  %v794_v14 = vshll.u32 %v793_v62, 23  ;;  %v973_v22 = vsel %vm965_vm4, %v956_v3, %v972_v32  ;;  %v1392_v49 = vadd.s32 4294967294, %v891_v55 }
 0x197   :  { %v974_v56 = vsel %vm964_vm5, %v971_v53, %v973_v22  ;;  %v1042_v17 = vand.u32 2139095040, %v2085_v31  ;;  %v986_v2 = vmul.u32 %v2081_v34, %v970_v13  ;;  %v798_v6 = vcvt.s32.f32 %v791_v37 }
 0x198   :  { %v2125_v48 = vmul.u32.u64.low %v2081_v34, %v974_v56  ;;  %v2126_v43 = vmul.u32.u64.high %v2081_v34, %v974_v56, %v2125_v48  ;;  %vm1393_vm6 = vcmp.lt.s32.totalorder %v1392_v49, 0  ;;  %v795_v46 = vor.u32 4788187, %v794_v14 }
 0x199   :  { %v894_v7 = vsel %vm1393_vm6, 0, %v1392_v49  ;;  %v1043_v29 = vshrl.u32 %v1042_v17, 23  ;;  %v879_v62 = vadd.s32 %v2044_v33, %v2062_v42  ;;  %v1039_v24 = vand.u32 2147483647, %v2085_v31 }
 0x19a   :  { %v899_v20 = vsub.s32 4294967266, %v894_v7  ;;  %v989_v16 = vadd.s32 1, %v2126_v43  ;;  %v796_v3 = vand.u32 2147483647, %v795_v46  ;;  %vm988_vm7 = vc.u32 %v2131_v50, %v2125_v48 }
 0x19b   :  { %v1399_v26 = vadd.s32 4294967169, %v1043_v29  ;;  %v1403_v52 = vadd.f32 -275.0, %v1900_v5  ;;  %v895_v15 = vsub.s32 32, %v894_v7  ;;  %v896_v32 = vshll.u32 %v2101_v54, %v894_v7 }
 0x19c   :  { %v990_v45 = vsel %vm988_vm7, %v989_v16, %v2126_v43  ;;  %v900_v44 = vadd.s32 127, %v899_v20  ;;  %v799_v55 = vmul.f32 %v798_v6, %v796_v3  ;;  %v1046_v30 = vand.u32 8388607, %v1039_v24 }
 0x19d   :  { %v991_v34 = vadd.s32 %v990_v45, %v986_v2  ;;  %v1049_v53 = vadd.s32 1, %v1399_v26  ;;  %v1146_v33 = vmul.f32 0.04, %v1403_v52  ;;  %v897_v42 = vshrl.u32 %v879_v62, %v895_v15 }
 0x19e   :  { %v901_v25 = vshll.u32 %v900_v44, 23  ;;  %v689_v5 = vmul.f32 0.5, %v1842_v38  ;;  %v800_v49 = vxor.u32 2147483648, %v799_v55  ;;  %vm718_vm9 = vcmp.lt.s32.totalorder %v1919_v10, 0 }
 0x19f   :  { %v992_v9 = vadd.s32 536870912, %v991_v34  ;;  %vm1050_vm8 = vcmp.gt.s32.totalorder %v1049_v53, 0  ;;  %v1147_v39 = vmul.f32 %v1146_v33, %v1146_v33  ;;  %v898_v54 = vor.u32 %v897_v42, %v896_v32 }
 0x1a0   :  { %v1051_v14 = vsel %vm1050_vm8, %v1049_v53, 0  ;;  %v902_v43 = vor.u32 4788187, %v901_v25  ;;  %v1047_v4 = vor.u32 8388608, %v1046_v30  ;;  %v1404_v17 = vadd.f32 -50.0, %v689_v5 }
 0x1a1   :  { %v2145_v22 = vshrl.u32 %v992_v9, 30  ;;  %v1053_v59 = vand.u32 31, %v1051_v14  ;;  %v2156_v38 = vmul.f32 0.5, %v1846_v40  ;;  %v801_v20 = vsel %vm718_vm9, %v800_v49, %v799_v55 }
 0x1a2   :  { %vm2163_vm10 = vcmp.le.f32.partialorder %v716_v36, 0.7853982  ;;  %v987_v29 = vadd.s32 %v2125_v48, %v2131_v50  ;;  %v1052_v3 = vshrl.u32 %v1051_v14, 5  ;;  %v1148_v26 = vsub.f32 0.0, %v1147_v39 }
 0x1a3   :  { %v994_v56 = vshll.u32 %v2145_v22, 30  ;;  %v1054_v19 = vsub.s32 32, %v1053_v59  ;;  %v1056_v37 = vshll.u32 %v1633_v51, %v1053_v59  ;;  %v1059_v7 = vshll.u32 %v1634_v57, %v1053_v59 }
 0x1a4   :  { %v905_v62 = vcvt.s32.f32 %v898_v54  ;;  %v1062_v45 = vshll.u32 %v1635_v58, %v1053_v59  ;;  %v2171_v52 = vshll.u32 %v1047_v4, 8  ;;  %v903_v15 = vand.u32 2147483647, %v902_v43 }
 0x1a5   :  { %v2150_v13 = vsub.s32 %v991_v34, %v994_v56  ;;  %v1057_v46 = vshrl.u32 %v1634_v57, %v1054_v19  ;;  %v1060_v6 = vshrl.u32 %v1635_v58, %v1054_v19  ;;  %v2173_v36 = vmul.f32 %v1404_v17, %v1404_v17 }
 0x1a6   :  { %v1063_v55 = vshrl.u32 %v1636_v60, %v1054_v19  ;;  %v1065_v48 = vshll.u32 %v1636_v60, %v1053_v59  ;;  %v1066_v50 = vshrl.u32 %v1637_v61, %v1054_v19  ;;  %v1068_v9 = vshll.u32 %v1637_v61, %v1053_v59 }
 0x1a7   :  { %v997_v2 = vsub.s32 0, %v2150_v13  ;;  %v1058_v44 = vor.u32 %v1057_v46, %v1056_v37  ;;  %v1061_v34 = vor.u32 %v1060_v6, %v1059_v7  ;;  %v1069_v32 = vshrl.u32 %v1638_v11, %v1054_v19 }
 0x1a8   :  { %vm1071_vm11 = vcmp.lt.s32.totalorder %v1052_v3, 1  ;;  %v1149_v30 = vmul.f32 1.442695, %v1148_v26  ;;  %v1055_v33 = vshrl.u32 %v1633_v51, %v1054_v19  ;;  %v1064_v42 = vor.u32 %v1063_v55, %v1062_v45 }
 0x1a9   :  { %v1395_v40 = vmin.u32 %v997_v2, %v2150_v13  ;;  %v1067_v25 = vor.u32 %v1066_v50, %v1065_v48  ;;  %v1070_v5 = vor.u32 %v1069_v32, %v1068_v9  ;;  %vm1072_vm12 = vcmp.lt.s32.totalorder %v1052_v3, 2 }
 0x1aa   :  { %vm1073_vm13 = vcmp.lt.s32.totalorder %v1052_v3, 3  ;;  %vm1074_vm14 = vcmp.lt.s32.totalorder %v1052_v3, 4  ;;  %v1079_v56 = vsel %vm1071_vm11, %v1058_v44, %v1061_v34  ;;  %v906_v54 = vmul.f32 %v905_v62, %v903_v15 }
 0x1ab   :  { %v999_v53 = vclz %v1395_v40  ;;  %v1076_v49 = vsel %vm1074_vm14, %v1064_v42, 2102212464  ;;  %v1080_v39 = vsel %vm1074_vm14, %v1067_v25, 920167782  ;;  %v2184_v4 = vadd.f32 20.0, %v2173_v36 }
 0x1ac   :  { %v1081_v43 = vsel %vm1073_vm13, %v1064_v42, %v1080_v39  ;;  %v1075_v46 = vsel %vm1071_vm11, %v1055_v33, %v1058_v44  ;;  %v1083_v7 = vsel %vm1071_vm11, %v1061_v34, %v1064_v42  ;;  %v1077_v17 = vsel %vm1073_vm13, %v1061_v34, %v1076_v49 }
 0x1ad   :  { %v1396_v14 = vadd.s32 4294967294, %v999_v53  ;;  %v1082_v2 = vsel %vm1072_vm12, %v1079_v56, %v1081_v43  ;;  %v1084_v6 = vsel %vm1074_vm14, %v1070_v5, 1326507024  ;;  %1517 = vpow2.f32 %v1149_v30 }
 0x1ae   :  { %v804_v26 = vsel %vm2163_vm10, %v1919_v10, %v801_v20  ;;  %v1085_v40 = vsel %vm1073_vm13, %v1067_v25, %v1084_v6  ;;  %v2196_v15 = vmul.u32.u64.low %v2171_v52, %v1082_v2  ;;  %v2197_v44 = vmul.u32.u64.high %v2171_v52, %v1082_v2, %v2196_v15 }
 0x1af   :  { %vm1397_vm15 = vcmp.lt.s32.totalorder %v1396_v14, 0  ;;  %v1086_v45 = vsel %vm1072_vm12, %v1083_v7, %v1085_v40  ;;  %v1180_v34 = vmul.f32 0.045, %v2156_v38  ;;  %v1078_v50 = vsel %vm1072_vm12, %v1075_v46, %v1077_v17 }
 0x1b0   :  { %v1002_v59 = vsel %vm1397_vm15, 0, %v1396_v14  ;;  %v907_v9 = vxor.u32 2147483648, %v906_v54  ;;  %v2204_v20 = vmul.u32.u64.low %v2171_v52, %v1086_v45  ;;  %v2205_v32 = vmul.u32.u64.high %v2171_v52, %v1086_v45, %v2204_v20 }
 0x1b1   :  { %v1003_v37 = vsub.s32 32, %v1002_v59  ;;  %v1007_v19 = vsub.s32 4294967266, %v1002_v59  ;;  %v1004_v53 = vshll.u32 %v2150_v13, %v1002_v59  ;;  %1519 = vrsqrt.f32 %v2184_v4 }
 0x1b2   :  { %vm825_vm0 = vcmp.lt.s32.totalorder %v1921_v28, 0  ;;  %v802_v30 = vsub.s32 4, %v2027_v12  ;;  %v1094_v14 = vmul.u32 %v2171_v52, %v1078_v50  ;;  %v1097_v33 = vadd.s32 1, %v2197_v44 }
 0x1b3   :  { %v1008_v62 = vadd.s32 127, %v1007_v19  ;;  %v1005_v55 = vshrl.u32 %v987_v29, %v1003_v37  ;;  %1521 = vcosq.f32 %v804_v26  ;;  %vm2214_vm1 = vcmp.le.f32.partialorder %v823_v1, 0.7853982 }
 0x1b4   :  { %1523 = vsinq.f32 %v804_v26  ;;  %v908_v42 = vsel %vm825_vm0, %v907_v9, %v906_v54  ;;  %vm1096_vm2 = vc.u32 %v2205_v32, %v2196_v15  ;;  %v1181_v25 = vadd.f32 1.0, %v1180_v34 }
 0x1b5   :  { %v1009_v48 = vshll.u32 %v1008_v62, 23  ;;  %v1006_v29 = vor.u32 %v1005_v55, %v1004_v53  ;;  %v1098_v52 = vsel %vm1096_vm2, %v1097_v33, %v2197_v44  ;;  %v803_v1 = vsel %vm718_vm9, %v802_v30, %v2027_v12 }
 0x1b6   :  { %v1099_v49 = vadd.s32 %v1098_v52, %v1094_v14  ;;  %1525 = vrcp.f32 %v1181_v25  ;;  %v911_v56 = vsel %vm2214_vm1, %v1921_v28, %v908_v42  ;;  %v909_v43 = vsub.s32 4, %v2087_v21 }
 0x1b7   :  { %v1010_v3 = vor.u32 4788187, %v1009_v48  ;;  %v1518_v5 = vpop.eup %1517  ;;  %v1013_v59 = vcvt.s32.f32 %v1006_v29  ;;  %v805_v19 = vsel %vm2163_vm10, 0, %v803_v1  ;;  %1527 = vcosq.f32 %v911_v56 }
 0x1b8   :  { %v1151_v54 = vmul.f32 30.0, %v1518_v5  ;;  %v1100_v37 = vadd.s32 536870912, %v1099_v49  ;;  %vm1172_vm3 = vcmp.eq.f32.partialorder %v2184_v4, inf  ;;  %v1175_v12 = vand.u32 2147483648, %v2184_v4 }
 0x1b9   :  { %v1011_v39 = vand.u32 2147483647, %v1010_v3  ;;  %vm1174_vm4 = vcmp.eq.f32.partialorder %v2184_v4, 0.0  ;;  %v910_v16 = vsel %vm825_vm0, %v909_v43, %v2087_v21  ;;  %v809_v45 = vand.u32 3, %v805_v19 }
 0x1ba   :  { %v1186_v46 = vmul.f32 2.0, %v1151_v54  ;;  %v2232_v17 = vshrl.u32 %v1100_v37, 30  ;;  %1529 = vsinq.f32 %v911_v56  ;;  %v1017_v55 = vsub.s32 4, %v2145_v22 }
 0x1bb   :  { %v1520_v7 = vpop.eup %1519  ;;  %v1014_v2 = vmul.f32 %v1013_v59, %v1011_v39  ;;  %v912_v9 = vsel %vm2214_vm1, 0, %v910_v16  ;;  %vm2253_vm5 = vcmp.le.f32.partialorder %v931_v27, 0.7853982  ;;  %vm933_vm6 = vcmp.lt.s32.totalorder %v1940_v47, 0 }
 0x1bc   :  { %v1171_v6 = vmul.f32 %v1520_v7, %v2184_v4  ;;  %v2238_v26 = vmul.f32 0.017453292, %v1186_v46  ;;  %v1102_v62 = vshll.u32 %v2232_v17, 30  ;;  %vm811_vm7 = vcmp.eq.s32.totalorder %v809_v45, 0 }
 0x1bd   :  { %v1522_v40 = vpop.eup %1521  ;;  %v1015_v20 = vxor.u32 2147483648, %v1014_v2  ;;  %vm814_vm8 = vcmp.eq.s32.totalorder %v809_v45, 2  ;;  %v2259_v13 = vand.u32 3, %v912_v9  ;;  %v1018_v42 = vsel %vm933_vm6, %v1017_v55, %v2145_v22 }
 0x1be   :  { %v1173_v44 = vsel %vm1172_vm3, %v2184_v4, %v1171_v6  ;;  %v1191_v34 = vand.u32 2139095040, %v2238_v26  ;;  %v1524_v53 = vpop.eup %1523  ;;  %v2247_v48 = vsub.s32 %v1099_v49, %v1102_v62  ;;  %v815_v29 = vxor.u32 2147483648, %v1522_v40 }
 0x1bf   :  { %v1176_v50 = vsel %vm1174_vm4, %v1175_v12, %v1173_v44  ;;  %v812_v33 = vxor.u32 2147483648, %v1524_v53  ;;  %v1016_v52 = vsel %vm933_vm6, %v1015_v20, %v1014_v2  ;;  %v1152_v27 = vmul.f32 %v2156_v38, %v2156_v38 }
 0x1c0   :  { %1531 = vrcp.f32 %v1176_v50  ;;  %v1192_v21 = vshrl.u32 %v1191_v34, 23  ;;  %v1526_v30 = vpop.eup %1525  ;;  %v1105_v14 = vsub.s32 0, %v2247_v48  ;;  %v2417_v1 = vsub.f32 %v1828_v0, %v1826_v63 }
 0x1c1   :  { %v2270_v56 = vpop.eup %1527  ;;  %vm810_vm9 = vcmp.lt.s32.totalorder %v809_v45, 2  ;;  %v813_v59 = vsel %vm811_vm7, %v1522_v40, %v812_v33  ;;  %v816_v54 = vsel %vm814_vm8, %v815_v29, %v1524_v53  ;;  %v1020_v22 = vsel %vm2253_vm5, 0, %v1018_v42 }
 0x1c2   :  { %v1405_v3 = vadd.s32 4294967169, %v1192_v21  ;;  %v1400_v25 = vmin.u32 %v1105_v14, %v2247_v48  ;;  %v2268_v49 = vmul.f32 %v1526_v30, %v2417_v1  ;;  %v1019_v43 = vsel %vm2253_vm5, %v1940_v47, %v1016_v52 }
 0x1c3   :  { %v1188_v19 = vand.u32 2147483647, %v2238_v26  ;;  %vm921_vm11 = vcmp.eq.s32.totalorder %v2259_v13, 2  ;;  %v2280_v0 = vmul.f32 %v1152_v27, %v2156_v38  ;;  %v1168_v46 = vmul.f32 0.015, %v2173_v36 }
 0x1c4   :  { %v1198_v5 = vadd.s32 1, %v1405_v3  ;;  %v1107_v39 = vclz %v1400_v25  ;;  %v2283_v12 = vpop.eup %1529  ;;  %v922_v2 = vxor.u32 2147483648, %v2270_v56  ;;  %v2286_v6 = vand.u32 3, %v1020_v22 }
 0x1c5   :  { %v1095_v16 = vadd.s32 %v2196_v15, %v2205_v32  ;;  %v2291_v40 = vsel %vm810_vm9, %v813_v59, %v816_v54  ;;  %1533 = vcosq.f32 %v1019_v43  ;;  %v1195_v50 = vand.u32 8388607, %v1188_v19 }
 0x1c6   :  { %vm1199_vm10 = vcmp.gt.s32.totalorder %v1198_v5, 0  ;;  %v1401_v37 = vadd.s32 4294967294, %v1107_v39  ;;  %v919_v9 = vxor.u32 2147483648, %v2283_v12  ;;  %1535 = vsinq.f32 %v1019_v43 }
 0x1c7   :  { %v1200_v63 = vsel %vm1199_vm10, %v1198_v5, 0  ;;  %vm918_vm13 = vcmp.eq.s32.totalorder %v2259_v13, 0  ;;  %v2302_v32 = vsel %vm921_vm11, %v922_v2, %v2283_v12  ;;  %vm1041_vm14 = vcmp.lt.s32.totalorder %v2085_v31, 0 }
 0x1c8   :  { %v1202_v7 = vand.u32 31, %v1200_v63  ;;  %vm1402_vm12 = vcmp.lt.s32.totalorder %v1401_v37, 0  ;;  %v1125_v30 = vsub.s32 4, %v2232_v17  ;;  %v1201_v4 = vshrl.u32 %v1200_v63, 5 }
 0x1c9   :  { %v1110_v44 = vsel %vm1402_vm12, 0, %v1401_v37  ;;  %vm2311_vm15 = vcmp.le.f32.partialorder %v1039_v24, 0.7853982  ;;  %v1196_v25 = vor.u32 8388608, %v1195_v50  ;;  %vm808_vm0 = vweird.f32 %v1919_v10 }
 0x1ca   :  { %v1532_v62 = vpop.eup %1531  ;;  %v1203_v34 = vsub.s32 32, %v1202_v7  ;;  %v1111_v53 = vsub.s32 32, %v1110_v44  ;;  %v1112_v36 = vshll.u32 %v2247_v48, %v1110_v44  ;;  %v1115_v55 = vsub.s32 4294967266, %v1110_v44 }
 0x1cb   :  { %v1178_v20 = vmul.f32 %v1532_v62, %v1168_v46  ;;  %v1205_v15 = vshll.u32 %v1633_v51, %v1202_v7  ;;  %v1208_v14 = vshll.u32 %v1634_v57, %v1202_v7  ;;  %vm917_vm1 = vcmp.lt.s32.totalorder %v2259_v13, 2 }
 0x1cc   :  { %v1113_v45 = vshrl.u32 %v1095_v16, %v1111_v53  ;;  %v1116_v21 = vadd.s32 127, %v1115_v55  ;;  %v1206_v48 = vshrl.u32 %v1634_v57, %v1203_v34  ;;  %v1209_v33 = vshrl.u32 %v1635_v58, %v1203_v34 }
 0x1cd   :  { %v1204_v52 = vshrl.u32 %v1633_v51, %v1203_v34  ;;  %v1179_v27 = vadd.f32 1.0, %v1178_v20  ;;  %v1211_v57 = vshll.u32 %v1635_v58, %v1202_v7  ;;  %v1212_v24 = vshrl.u32 %v1636_v60, %v1203_v34 }
 0x1ce   :  { %v1114_v3 = vor.u32 %v1113_v45, %v1112_v36  ;;  %v1117_v42 = vshll.u32 %v1116_v21, 23  ;;  %v1207_v5 = vor.u32 %v1206_v48, %v1205_v15  ;;  %v1210_v1 = vor.u32 %v1209_v33, %v1208_v14 }
 0x1cf   :  { %v1214_v54 = vshll.u32 %v1636_v60, %v1202_v7  ;;  %vm1026_vm2 = vcmp.eq.s32.totalorder %v2286_v6, 0  ;;  %vm1029_vm3 = vcmp.eq.s32.totalorder %v2286_v6, 2  ;;  %v1215_v51 = vshrl.u32 %v1637_v61, %v1203_v34  ;;  %v1534_v46 = vpop.eup %1533 }
 0x1d0   :  { %v1118_v39 = vor.u32 4788187, %v1117_v42  ;;  %v1121_v59 = vcvt.s32.f32 %v1114_v3  ;;  %v1217_v22 = vshll.u32 %v1637_v61, %v1202_v7  ;;  %v1218_v43 = vshrl.u32 %v1638_v11, %v1203_v34  ;;  %v1536_v53 = vpop.eup %1535 }
 0x1d1   :  { %vm1220_vm4 = vcmp.lt.s32.totalorder %v1201_v4, 1  ;;  %v1213_v37 = vor.u32 %v1212_v24, %v1211_v57  ;;  %vm1221_vm5 = vcmp.lt.s32.totalorder %v1201_v4, 2  ;;  %v1236_v63 = vshll.u32 %v1196_v25, 8 }
 0x1d2   :  { %v1119_v58 = vand.u32 2147483647, %v1118_v39  ;;  %v1216_v12 = vor.u32 %v1215_v51, %v1214_v54  ;;  %v1219_v2 = vor.u32 %v1218_v43, %v1217_v22  ;;  %vm1222_vm6 = vcmp.lt.s32.totalorder %v1201_v4, 3 }
 0x1d3   :  { %vm1223_vm7 = vcmp.lt.s32.totalorder %v1201_v4, 4  ;;  %v1228_v62 = vsel %vm1220_vm4, %v1207_v5, %v1210_v1  ;;  %v1232_v44 = vsel %vm1220_vm4, %v1210_v1, %v1213_v37  ;;  %v1224_v36 = vsel %vm1220_vm4, %v1204_v52, %v1207_v5 }
 0x1d4   :  { %v1122_v60 = vmul.f32 %v1121_v59, %v1119_v58  ;;  %v1225_v16 = vsel %vm1223_vm7, %v1213_v37, 2102212464  ;;  %v1229_v55 = vsel %vm1223_vm7, %v1216_v12, 920167782  ;;  %v1233_v61 = vsel %vm1223_vm7, %v1219_v2, 1326507024 }
 0x1d5   :  { %1537 = vrcp.f32 %v1179_v27  ;;  %v1226_v7 = vsel %vm1222_vm6, %v1210_v1, %v1225_v16  ;;  %v1230_v34 = vsel %vm1222_vm6, %v1213_v37, %v1229_v55  ;;  %v1234_v50 = vsel %vm1222_vm6, %v1216_v12, %v1233_v61 }
 0x1d6   :  { %v1123_v11 = vxor.u32 2147483648, %v1122_v60  ;;  %v920_v20 = vsel %vm918_vm13, %v2270_v56, %v919_v9  ;;  %v1030_v15 = vxor.u32 2147483648, %v1534_v46  ;;  %v1231_v45 = vsel %vm1221_vm5, %v1228_v62, %v1230_v34 }
 0x1d7   :  { %v1235_v21 = vsel %vm1221_vm5, %v1232_v44, %v1234_v50  ;;  %v1027_v48 = vxor.u32 2147483648, %v1536_v53  ;;  %v1227_v25 = vsel %vm1221_vm5, %v1224_v36, %v1226_v7  ;;  %v818_v9 = vsel %vm808_vm0, nan, %v2291_v40 }
 0x1d8   :  { %v1124_v14 = vsel %vm1041_vm14, %v1123_v11, %v1122_v60  ;;  %v2333_v33 = vmul.u32.u64.low %v1236_v63, %v1235_v21  ;;  %v2334_v3 = vmul.u32.u64.high %v1236_v63, %v1235_v21, %v2333_v33  ;;  %vm915_vm8 = vweird.f32 %v1921_v28 }
 0x1d9   :  { %v1127_v42 = vsel %vm2311_vm15, %v2085_v31, %v1124_v14  ;;  %v2340_v52 = vmul.u32.u64.low %v1236_v63, %v1231_v45  ;;  %v2341_v56 = vmul.u32.u64.high %v1236_v63, %v1231_v45, %v2340_v52  ;;  %v1126_v27 = vsel %vm1041_vm14, %v1125_v30, %v2232_v17 }
 0x1da   :  { %1539 = vcosq.f32 %v1127_v42  ;;  %v924_v5 = vsel %vm917_vm1, %v920_v20, %v2302_v32  ;;  %vm1025_vm9 = vcmp.lt.s32.totalorder %v2286_v6, 2  ;;  %v1154_v4 = vmul.f32 %v2280_v0, %v2280_v0 }
 0x1db   :  { %1541 = vsinq.f32 %v1127_v42  ;;  %v1028_v10 = vsel %vm1026_vm2, %v1534_v46, %v1027_v48  ;;  %v1031_v40 = vsel %vm1029_vm3, %v1030_v15, %v1536_v53  ;;  %v1243_v1 = vmul.u32 %v1236_v63, %v1227_v25 }
 0x1dc   :  { %vm1245_vm10 = vc.u32 %v2334_v3, %v2340_v52  ;;  %v819_v17 = vmul.f32 0.17, %v818_v9  ;;  %v1128_v13 = vsel %vm2311_vm15, 0, %v1126_v27  ;;  %v1246_v32 = vadd.s32 1, %v2341_v56 }
 0x1dd   :  { %v925_v30 = vsel %vm915_vm8, nan, %v924_v5  ;;  %vm1023_vm11 = vweird.f32 %v1940_v47  ;;  %v1032_v0 = vsel %vm1025_vm9, %v1028_v10, %v1031_v40  ;;  %v1132_v6 = vand.u32 3, %v1128_v13 }
 0x1de   :  { %v1247_v39 = vsel %vm1245_vm10, %v1246_v32, %v2341_v56  ;;  %v1155_v59 = vmul.f32 %v1154_v4, %v2156_v38  ;;  %v2420_v54 = vsub.f32 %v1786_v18, %v1788_v8  ;;  %v820_v51 = vsub.f32 1.0, %v819_v17 }
 0x1df   :  { %v1538_v57 = vpop.eup %1537  ;;  %v1248_v24 = vadd.s32 %v1247_v39, %v1243_v1  ;;  %v926_v22 = vmul.f32 0.24, %v925_v30  ;;  %v1033_v43 = vsel %vm1023_vm11, nan, %v1032_v0  ;;  %vm1137_vm12 = vcmp.eq.s32.totalorder %v1132_v6, 2 }
 0x1e0   :  { %v2372_v29 = vmul.f32 %v1538_v57, %v2420_v54  ;;  %v1156_v37 = vadd.f32 6.1035156e+09, %v1155_v59  ;;  %v1034_v12 = vmul.f32 0.32, %v1033_v43  ;;  %vm1134_vm13 = vcmp.eq.s32.totalorder %v1132_v6, 0 }
 0x1e1   :  { %v1249_v28 = vadd.s32 536870912, %v1248_v24  ;;  %v927_v46 = vadd.f32 %v926_v22, %v820_v51  ;;  %vm1133_vm14 = vcmp.lt.s32.totalorder %v1132_v6, 2  ;;  %vm1131_vm15 = vweird.f32 %v2085_v31 }
 0x1e2   :  { %1543 = vrcp.f32 %v1156_v37  ;;  %v1182_v11 = vmul.f32 0.015, %v2156_v38  ;;  %v685_v31 = vmax.f32 %v1778_v23, %v1763_v35  ;;  %v1244_v21 = vadd.s32 %v2340_v52, %v2334_v3 }
 0x1e3   :  { %v1250_v47 = vshrl.u32 %v1249_v28, 30  ;;  %v1035_v44 = vadd.f32 %v1034_v12, %v927_v46  ;;  %v1300_v13 = vmul.f32 %v2268_v49, %v2268_v49  ;;  %vm1190_vm1 = vcmp.lt.s32.totalorder %v2238_v26, 0 }
 0x1e4   :  { %v1540_v58 = vpop.eup %1539  ;;  %v686_v56 = vsub.f32 1.0, %v685_v31  ;;  %vm1189_vm2 = vcmp.le.f32.partialorder %v1188_v19, 0.7853982  ;;  %vm1280_vm8 = vweird.f32 %v2238_v26 }
 0x1e5   :  { %v1542_v63 = vpop.eup %1541  ;;  %v1138_v2 = vxor.u32 2147483648, %v1540_v58  ;;  %v1251_v16 = vshll.u32 %v1250_v47, 30  ;;  %v1274_v3 = vsub.s32 4, %v1250_v47 }
 0x1e6   :  { %v1135_v60 = vxor.u32 2147483648, %v1542_v63  ;;  %v687_v10 = vmul.f32 %v686_v56, %v2109_v41 }
 0x1e7   :  { %v1139_v18 = vsel %vm1137_vm12, %v1138_v2, %v1542_v63  ;;  %v1252_v62 = vsub.s32 %v1248_v24, %v1251_v16  ;;  %v1275_v30 = vsel %vm1190_vm1, %v1274_v3, %v1250_v47 }
 0x1e8   :  { %v1136_v8 = vsel %vm1134_vm13, %v1540_v58, %v1135_v60  ;;  %v1277_v6 = vsel %vm1189_vm2, 0, %v1275_v30 }
 0x1e9   :  { %v1140_v53 = vsel %vm1133_vm14, %v1136_v8, %v1139_v18  ;;  %v1254_v55 = vsub.s32 0, %v1252_v62  ;;  %v1281_v24 = vadd.s32 3, %v1277_v6 }
 0x1ea   :  { %v1141_v36 = vsel %vm1131_vm15, nan, %v1140_v53 }
 0x1eb   :  { %v1142_v61 = vmul.f32 0.2, %v1141_v36  ;;  %v1406_v7 = vmin.u32 %v1254_v55, %v1252_v62  ;;  %v1282_v22 = vand.u32 3, %v1281_v24  ;;  %v2421_v55 = vmov 0.0  }
 0x1ec   :  { %v1544_v48 = vpop.eup %1543 }
 0x1ed   :  { %v1143_v34 = vsub.f32 %v1035_v44, %v1142_v61  ;;  %v1256_v50 = vclz %v1406_v7  ;;  %v1158_v38 = vmul.f32 %v1544_v48, %v1155_v59  ;;  %vm1287_vm5 = vcmp.eq.s32.totalorder %v1282_v22, 2 }
 0x1ee   :  { %vm1284_vm6 = vcmp.eq.s32.totalorder %v1282_v22, 0  ;;  %vm1283_vm7 = vcmp.lt.s32.totalorder %v1282_v22, 2  ;;  %v40_v7 = vlaneseq }
 0x1ef   :  { %v1183_v20 = vmul.f32 %v1182_v11, %v1143_v34  ;;  %v1407_v15 = vadd.s32 4294967294, %v1256_v50  ;;  %vm1161_vm3 = vcmp.eq.f32.partialorder %v1158_v38, inf  ;;  %v1164_v51 = vand.u32 2147483648, %v1158_v38 }
 0x1f0   :  { %vm1163_vm4 = vcmp.eq.f32.partialorder %v1158_v38, 0.0  ;;  %v41_v34 = vshrl.u32 %v40_v7, 7  ;;  %v46_v50 = vand.u32 127, %v40_v7 }
 0x1f1   :  { %v1184_v45 = vadd.f32 1.0, %v1183_v20  ;;  %vm1408_vm0 = vcmp.lt.s32.totalorder %v1407_v15, 0 }
 0x1f2   :  { %v1259_v14 = vsel %vm1408_vm0, 0, %v1407_v15  ;;  %v47_v20 = vmul.u32 128, %v41_v34 }
 0x1f3   :  { %1545 = vrcp.f32 %v1184_v45  ;;  %v1260_v33 = vsub.s32 32, %v1259_v14  ;;  %v1261_v42 = vshll.u32 %v1252_v62, %v1259_v14  ;;  %v1264_v25 = vsub.s32 4294967266, %v1259_v14 }
 0x1f4   :  { %1547 = vrsqrt.f32 %v1158_v38  ;;  %v1299_v62 = vmul.f32 %v2372_v29, %v2372_v29  ;;  %v48_v45 = vadd.s32 %v47_v20, %v46_v50 }
 0x1f5   :  { %v1262_v9 = vshrl.u32 %v1244_v21, %v1260_v33  ;;  %v1265_v27 = vadd.s32 127, %v1264_v25 }
 0x1f6   :  { %vm49_vm12 = vcmp.lt.s32.totalorder %v48_v45, 512 }
 0x1f7   :  { %v1263_v5 = vor.u32 %v1262_v9, %v1261_v42  ;;  %v1266_v4 = vshll.u32 %v1265_v27, 23 }
 0x1f9   :  { %v1267_v40 = vor.u32 4788187, %v1266_v4  ;;  %v1270_v35 = vcvt.s32.f32 %v1263_v5 }
 0x1fb   :  { %v1268_v23 = vand.u32 2147483647, %v1267_v40 }
 0x1fd   :  { %v1546_v52 = vpop.eup %1545  ;;  %v1271_v1 = vmul.f32 %v1270_v35, %v1268_v23 }
 0x1fe   :  { %v1298_v17 = vmul.f32 %v1546_v52, %v687_v10  ;;  %v1548_v59 = vpop.eup %1547 }
 0x1ff   :  { %v1272_v32 = vxor.u32 2147483648, %v1271_v1  ;;  %v1160_v54 = vmul.f32 %v1548_v59, %v1158_v38 }
 0x200   :  { %v1301_v57 = vmul.f32 %v1298_v17, %v1298_v17 }
 0x201   :  { %v1273_v41 = vsel %vm1190_vm1, %v1272_v32, %v1271_v1  ;;  %v1162_v43 = vsel %vm1161_vm3, %v1158_v38, %v1160_v54 }
 0x202   :  { %v1302_v0 = vadd.f32 %v1301_v57, %v1300_v13  ;;  %v1276_v39 = vsel %vm1189_vm2, %v2238_v26, %v1273_v41  ;;  %v1165_v19 = vsel %vm1163_vm4, %v1164_v51, %v1162_v43 }
 0x203   :  { %1549 = vcosq.f32 %v1276_v39  ;;  %v1185_v63 = vmul.f32 -2.0, %v1165_v19 }
 0x204   :  { %1551 = vsinq.f32 %v1276_v39 }
 0x20d   :  { %v1550_v28 = vpop.eup %1549 }
 0x20e   :  { %v1552_v58 = vpop.eup %1551  ;;  %v1288_v37 = vxor.u32 2147483648, %v1550_v28 }
 0x20f   :  { %v1285_v47 = vxor.u32 2147483648, %v1552_v58 }
 0x210   :  { %v1289_v46 = vsel %vm1287_vm5, %v1288_v37, %v1552_v58 }
 0x211   :  { %v1286_v12 = vsel %vm1284_vm6, %v1550_v28, %v1285_v47 }
 0x212   :  { %v1290_v2 = vsel %vm1283_vm7, %v1286_v12, %v1289_v46 }
 0x213   :  { %v1291_v60 = vsel %vm1280_vm8, nan, %v1290_v2 }
 0x214   :  { %v1292_v16 = vmul.f32 %v1291_v60, %v1185_v63 }
 0x216   :  { %v1303_v18 = vmul.f32 %v2268_v49, %v1292_v16 }
 0x218   :  { %v1304_v8 = vmul.f32 %v1303_v18, %v1298_v17 }
 0x21a   :  { %v1305_v44 = vadd.f32 %v1304_v8, %v1302_v0 }
 0x21c   :  { %v1306_v53 = vmul.f32 %v1305_v44, %v686_v56 }
 0x21e   :  { %v1307_v36 = vadd.f32 %v1306_v53, %v1299_v62 }
 0x220   :  { %vm1308_vm9 = vcmp.le.f32.partialorder %v1307_v36, 0.0 }
 0x221   :  { %v1409_v61 = vsel %vm1308_vm9, 1.0, %v2421_v55 }
 0x222   :  { %v1311_v11 = vmul.f32 0.0001, %v1409_v61  ;;  %v1320_v29 = vsub.f32 1.0, %v1409_v61 }
 0x224   :  { %v1312_v26 = vadd.f32 %v1311_v11, %v1307_v36 }
 0x226   :  { %1553 = vrsqrt.f32 %v1312_v26  ;;  %vm1315_vm10 = vcmp.eq.f32.partialorder %v1312_v26, inf  ;;  %v1318_v49 = vand.u32 2147483648, %v1312_v26  ;;  %vm1317_vm11 = vcmp.eq.f32.partialorder %v1312_v26, 0.0 }
 0x230   :  { %v1554_v15 = vpop.eup %1553 }
 0x231   :  { %v1314_v31 = vmul.f32 %v1554_v15, %v1312_v26 }
 0x233   :  { %v1316_v21 = vsel %vm1315_vm10, %v1312_v26, %v1314_v31 }
 0x234   :  { %v1319_v48 = vsel %vm1317_vm11, %v1318_v49, %v1316_v21 }
 0x235   :  { %v1321_v14 = vmul.f32 %v1320_v29, %v1319_v48 }
 0x237   :  { %v1322_v33 = vsel %vm49_vm12, %v1321_v14, 0.0 }
 0x238   :  { %v1323_v42 = vrot.slane %v1322_v33, 4 }
 0x23a   :  { %v1324_v25 = vadd.f32 %v1323_v42, %v1322_v33 }
 0x23c   :  { %v1325_v56 = vrot.slane %v1324_v25, 2 }
 0x23e   :  { %v1326_v38 = vadd.f32 %v1325_v56, %v1324_v25 }
 0x240   :  { %v1327_v9 = vrot.slane %v1326_v38, 1 }
 0x242   :  { %v1328_v27 = vadd.f32 %v1327_v9, %v1326_v38 }
 0x244   :  { %1329 = vst [vmem:[#allocation7] sm:$0x1] %v1328_v27 }
 0x245   :  { %1610 = shalt.err (!%p1607_p6)
}
 0x246   :  { %s1611_s11 = scalar_lea.hbm %s2405_s2, 16 }
 0x247   :  { %p1612_p7 = scmp.ne.s32.totalorder %s2405_s2, %s1611_s11  ;;  %p1615_p8 = scmp.lt.u32.totalorder %s1611_s11, %s2405_s2 }
 0x249   :  { %p1617_p9 = pnand %p1615_p8, %p1612_p7 }
 0x24b   :  { %1620 = shalt.err (!%p1617_p9)
}
 0x24c   :  { %1339 = dma.vmem_to_hbm [thread:$0]  %s1337_s6, 16, %s2405_s2, [#allocation4]  }
 0x24d   :  { %1625 = dma.done.wait [#allocation4], 16  }
 0x24e   :  { %1626 = vsyncadd [#allocation4], 4294967280 }
 0x24f   :  { %1343 = vsyncpa [#allocation3], 1 }
 0x250   :  { %1344 = vsyncpa [#allocation6], 1 }
 0x251   :  { %1345 = vsyncpa [#allocation4], 1 }

</bundles_post_ra>
